<compile_context>
chip_gen: v7x
topology: tpu7x:2x2x1
jax: 0.10.0
libtpu: 0.0.40
codegen_flags: <defaults>
</compile_context>

<pallas_src>
import functools

import jax
import jax.numpy as jnp
from jax import lax
from jax.experimental import pallas as pl
from jax.experimental.pallas import tpu as pltpu

LANE = 128          # TPU lane width; candidate buffer is one vreg-row wide
SUBLANE = 8         # f32 sublane packing -> per-layer row blocks are 8-aligned
_D2_EPS = 1e-12     # floor for squared distances (guards log(0) after cancellation)
_DENOM_EPS = 1e-12  # guard for the LID denominator pole (all-equal neighbours)


def _round_up(x, m):
    return (x + m - 1) // m * m


# ----------------------------------------------------------------------------
# Fused kernel: squared distances + running top-(k+1) + LID + regressor + sigmoid
# ----------------------------------------------------------------------------
def make_lid_kernel(k: int, layer_channels, batch_pad: int, ref_tile: int, num_tiles: int):
    """layer_channels: static tuple of per-layer channel counts C_l."""
    num_layers = len(layer_channels)
    rows = num_layers * batch_pad            # stacked query rows, 8-aligned per layer
    width = LANE + ref_tile                  # [candidate buffer | current ref tile]
    neg_two_k = -2.0 * float(k)

    def kernel(*refs):
        # refs = [q_0, refT_0, r2_0, ..., q_{L-1}, refT_{L-1}, r2_{L-1},
        #         w_rows, bias, out, work]
        work_ref = refs[-1]                  # VMEM scratch (rows, LANE + ref_tile) f32
        out_ref = refs[-2]                   # (batch_pad, 1) f32
        wrows_ref = refs[3 * num_layers]     # (rows, 1) f32  regressor weight per row block
        bias_ref = refs[3 * num_layers + 1]  # (1, 1)    f32

        j = pl.program_id(0)

        # --- first ref tile: running top-(k+1) candidate buffer starts empty (+inf) ---
        @pl.when(j == 0)
        def _():
            work_ref[:, :LANE] = jnp.full((rows, LANE), jnp.inf, jnp.float32)

        # --- squared distances for this reference tile, one 8-aligned row block per layer ---
        for l in range(num_layers):
            q = refs[3 * l][...]             # (batch_pad, C_l) bf16, resident across the grid
            reft = refs[3 * l + 1][...]      # (C_l, ref_tile)  bf16, pipelined per tile
            r2 = refs[3 * l + 2][...]        # (1, ref_tile)    f32,  pipelined per tile
            qf = q.astype(jnp.float32)
            q2 = jnp.sum(qf * qf, axis=1, keepdims=True)                     # (batch_pad, 1)
            cross = jnp.dot(q, reft, preferred_element_type=jnp.float32)     # bf16 MXU, f32 acc
            d2 = jnp.maximum(q2 + r2 - 2.0 * cross, _D2_EPS)                 # (batch_pad, ref_tile)
            # 8-aligned sublane offset, 128-aligned lane offset -> no relayout copies.
            work_ref[l * batch_pad:(l + 1) * batch_pad, LANE:] = d2

        # --- pop the k+1 smallest of (old candidates U new tile); fully unrolled ---
        dcur = work_ref[...]                                                 # (rows, width)
        col = lax.broadcasted_iota(jnp.int32, (rows, width), 1)              # hoisted
        cand_lane = lax.broadcasted_iota(jnp.int32, (rows, LANE), 1)         # hoisted
        cand_new = jnp.full((rows, LANE), jnp.inf, jnp.float32)
        vk2 = None
        for i in range(k + 1):
            # First-occurrence tie-break removes exactly one element per pop, so the
            # multiset of popped values matches sorted(d)[0:k+1] even with duplicates.
            m = jnp.min(dcur, axis=1, keepdims=True)                         # (rows, 1)
            first = jnp.min(jnp.where(dcur == m, col, width), axis=1, keepdims=True)
            dcur = jnp.where(col == first, jnp.inf, dcur)
            # Collect the popped min into lane i; the log is NOT on this serial chain.
            cand_new = jnp.where(cand_lane == i, m, cand_new)
            if i == k:
                vk2 = m                                                      # v_k^2
        work_ref[:, :LANE] = cand_new        # carry candidates to the next ref tile

        # --- last tile: LID + logistic regressor + sigmoid -------------------------------
        @pl.when(j == num_tiles - 1)
        def _():
            # One vectorized EUP pass over the candidate vreg (logs hoisted out of the loop).
            logs = jnp.log(cand_new)                                         # inf lanes masked below
            sel = (cand_lane >= 1) & (cand_lane <= k)                        # sorted[1:k+1]
            sum_log = jnp.sum(jnp.where(sel, logs, 0.0), axis=1, keepdims=True)
            denom = jnp.minimum(sum_log - float(k) * jnp.log(vk2), -_DENOM_EPS)
            lid = neg_two_k / denom                                          # (rows, 1), >= 0

            # Regressor on the stacked LID column with 8-aligned row-block slices only:
            #   logit[b] = bias + sum_l w[l] * lid[l*batch_pad + b]
            contrib = wrows_ref[...] * lid                                   # (rows, 1)
            logit = bias_ref[...]                                            # (1,1) -> bcast
            for l in range(num_layers):
                logit = logit + contrib[l * batch_pad:(l + 1) * batch_pad, :]
            # Numerically stable sigmoid (parity with torch.sigmoid, no overflow).
            pos = logit >= 0.0
            z = jnp.exp(jnp.where(pos, -logit, logit))
            out_ref[...] = jnp.where(pos, 1.0 / (1.0 + z), z / (1.0 + z))

    return kernel


# ----------------------------------------------------------------------------
# Wrapper: one pallas_call, reduction grid over reference tiles
# ----------------------------------------------------------------------------
def lid_detector_head_pallas(feats, ref_t_list, ref_sqnorm_list, reg_w, reg_b, k,
                             ref_tile=None):
    num_layers = len(feats)
    batch = feats[0].shape[0]
    batch_pad = _round_up(batch, SUBLANE)
    rows = num_layers * batch_pad

    n_ref = ref_t_list[0].shape[1]
    k_eff = min(k, n_ref - 1)                  # mirrors lid.mle_batch's k = min(k, N-1)
    if ref_tile is None:
        ref_tile = n_ref
        for cand in (512, 256, 128):           # lane-aligned ref tiles, double-buffered by Pallas
            if n_ref % cand == 0 and n_ref > cand:
                ref_tile = cand
                break
    assert n_ref % ref_tile == 0, "reference count must be a multiple of the ref tile"
    assert ref_tile >= k_eff + 1, "first reference tile must hold at least k+1 entries"
    num_tiles = n_ref // ref_tile

    inputs, in_specs, layer_channels = [], [], []
    for f, reft, r2 in zip(feats, ref_t_list, ref_sqnorm_list):
        b, c = f.shape[0], f.shape[1]
        # GAP in XLA (off the kernel's serial critical path): only (B, C) queries are DMA'd,
        # and the C^2*HW in-kernel pooling matrix (VMEM blow-up at real channel counts) is gone.
        q = jnp.mean(f.astype(jnp.float32), axis=(2, 3))                     # (B, C)
        q_pad = jnp.zeros((batch_pad, c), jnp.bfloat16).at[:b].set(q.astype(jnp.bfloat16))
        inputs += [q_pad, reft.astype(jnp.bfloat16), r2.astype(jnp.float32)]
        in_specs += [
            pl.BlockSpec((batch_pad, c), lambda j: (0, 0)),      # resident query rows
            pl.BlockSpec((c, ref_tile), lambda j: (0, j)),       # pipelined ref tile
            pl.BlockSpec((1, ref_tile), lambda j: (0, j)),       # pipelined ||ref||^2 tile
        ]
        layer_channels.append(c)

    # Regressor weight replicated per 8-aligned row block (rows [l*8, (l+1)*8) carry w[l]).
    w_vec = jnp.reshape(reg_w.astype(jnp.float32), (num_layers, 1))
    w_rows = jnp.repeat(w_vec, batch_pad, axis=0)                            # (rows, 1)
    bias = jnp.reshape(reg_b.astype(jnp.float32), (1, 1))
    inputs += [w_rows, bias]
    in_specs += [
        pl.BlockSpec((rows, 1), lambda j: (0, 0)),
        pl.BlockSpec((1, 1), lambda j: (0, 0)),
    ]

    # Explicit VMEM budget (resident queries + double-buffered ref tiles + scratch) + headroom;
    # v5e's default scoped limit is only 16 MiB.
    resident = rows * (LANE + ref_tile) * 4 + rows * 4 + 4 + batch_pad * 4
    for c in layer_channels:
        resident += batch_pad * c * 2
        resident += 2 * (c * ref_tile * 2 + ref_tile * 4)        # 2-deep pipeline buffers
    vmem_limit = int(min(resident * 2 + (16 << 20), 100 << 20))

    prob = pl.pallas_call(
        make_lid_kernel(k_eff, tuple(layer_channels), batch_pad, ref_tile, num_tiles),
        grid=(num_tiles,),
        in_specs=in_specs,
        out_specs=pl.BlockSpec((batch_pad, 1), lambda j: (0, 0)),
        out_shape=jax.ShapeDtypeStruct((batch_pad, 1), jnp.float32),
        scratch_shapes=[pltpu.VMEM((rows, LANE + ref_tile), jnp.float32)],
        compiler_params=pltpu.CompilerParams(
            dimension_semantics=("arbitrary",),      # reduction over reference tiles
            vmem_limit_bytes=vmem_limit),
    )(*inputs)
    return prob[:batch, 0]                                       # .squeeze(1)


# ----------------------------------------------------------------------------
# Backbone ("model.feature_list") — external nn.Module in PyTorch, kept as XLA glue here.
# TODO(synk): backbone convolutions are plain lax.conv glue; only the LID detector head is Pallas.
# ----------------------------------------------------------------------------
def feature_list(params, x):
    # x: (B, 3, H, W) NCHW; weights OIHW (PyTorch conv convention)
    dn = ("NCHW", "OIHW", "NCHW")
    h1 = lax.conv_general_dilated(x, params["w1"], (1, 1), "SAME", dimension_numbers=dn)
    f1 = jax.nn.relu(h1 + params["b1"][None, :, None, None])
    h2 = lax.conv_general_dilated(f1, params["w2"], (2, 2), "SAME", dimension_numbers=dn)
    f2 = jax.nn.relu(h2 + params["b2"][None, :, None, None])
    return None, [f1, f2]


# ----------------------------------------------------------------------------
# LIDDetector.forward
# ----------------------------------------------------------------------------
def lid_detector_forward(x, backbone_params, ref_t_list, ref_sqnorm_list, reg_w, reg_b, k):
    _, feats = feature_list(backbone_params, x)
    return lid_detector_head_pallas(feats, ref_t_list, ref_sqnorm_list, reg_w, reg_b, k)


if __name__ == "__main__":
    key = jax.random.PRNGKey(0)
    k_input, k_w1, k_w2, k_ref0, k_ref1, k_reg = jax.random.split(key, 6)

    B, CIN, H, W = 2, 3, 16, 16
    C1, C2 = 4, 8            # layer_dims
    N_REF = 256              # reference activations per layer (from fit()); 2 ref tiles of 128
    K = 20                   # k nearest neighbours (k <= N_REF - 1)

    x = jax.random.normal(k_input, (B, CIN, H, W), dtype=jnp.float32)

    backbone_params = {
        "w1": 0.1 * jax.random.normal(k_w1, (C1, CIN, 3, 3), dtype=jnp.float32),
        "b1": jnp.zeros((C1,), jnp.float32),
        "w2": 0.1 * jax.random.normal(k_w2, (C2, C1, 3, 3), dtype=jnp.float32),
        "b2": jnp.zeros((C2,), jnp.float32),
    }

    # Deterministic stand-ins for the fitted reference activations and trained regressor.
    reference_feats = [
        jnp.abs(jax.random.normal(k_ref0, (N_REF, C1), dtype=jnp.float32)),
        jnp.abs(jax.random.normal(k_ref1, (N_REF, C2), dtype=jnp.float32)),
    ]
    reg_w = jax.random.normal(k_reg, (1, 2), dtype=jnp.float32)   # Linear(num_layers=2, 1)
    reg_b = jnp.zeros((1,), jnp.float32)

    # Fit-time hoisting: bf16 references pre-transposed, squared norms precomputed (in f32,
    # from the bf16-rounded values so q2 + r2 - 2*cross stays self-consistent).
    ref_bf16 = [r.astype(jnp.bfloat16) for r in reference_feats]
    ref_t_list = [r.T for r in ref_bf16]                                              # (C, N)
    ref_sqnorm_list = [jnp.sum(r.astype(jnp.float32) ** 2, axis=1)[None, :] for r in ref_bf16]

    fwd = jax.jit(functools.partial(lid_detector_forward, k=K))
    out = fwd(x, backbone_params, ref_t_list, ref_sqnorm_list, reg_w, reg_b)
    out = jax.block_until_ready(out)

    assert out.shape == (B,), out.shape
    assert bool(jnp.all(jnp.isfinite(out))) and bool(jnp.all((out >= 0) & (out <= 1)))
    print("KERNEL_OK")
</pallas_src>

<mosaic_0001>
module attributes {stable_mosaic.version = 11 : i64} {
  func.func @kernel(%arg0: i32, %arg1: memref<8x4xbf16, #tpu.memory_space<vmem>>, %arg2: memref<4x128xbf16, #tpu.memory_space<vmem>>, %arg3: memref<1x128xf32, #tpu.memory_space<vmem>>, %arg4: memref<8x8xbf16, #tpu.memory_space<vmem>>, %arg5: memref<8x128xbf16, #tpu.memory_space<vmem>>, %arg6: memref<1x128xf32, #tpu.memory_space<vmem>>, %arg7: memref<16x1xf32, #tpu.memory_space<vmem>>, %arg8: memref<1x1xf32, #tpu.memory_space<vmem>>, %arg9: memref<8x1xf32, #tpu.memory_space<vmem>>, %arg10: memref<16x256xf32, #tpu.memory_space<vmem>>) attributes {dimension_semantics = [#tpu.dimension_semantics<arbitrary>], iteration_bounds = array<i64: 2>, scalar_prefetch = 0 : i64, scratch_operands = 1 : i64, tpu.core_type = #tpu.core_type<tc>, window_params = [{pipeline_mode = #tpu.pipeline_mode<synchronous>, transform_indices = @transform_0, window_bounds = array<i64: 8, 4>}, {transform_indices = @transform_1, window_bounds = array<i64: 4, 128>}, {transform_indices = @transform_2, window_bounds = array<i64: 1, 128>}, {pipeline_mode = #tpu.pipeline_mode<synchronous>, transform_indices = @transform_3, window_bounds = array<i64: 8, 8>}, {transform_indices = @transform_4, window_bounds = array<i64: 8, 128>}, {transform_indices = @transform_5, window_bounds = array<i64: 1, 128>}, {pipeline_mode = #tpu.pipeline_mode<synchronous>, transform_indices = @transform_6, window_bounds = array<i64: 16, 1>}, {pipeline_mode = #tpu.pipeline_mode<synchronous>, transform_indices = @transform_7, window_bounds = array<i64: 1, 1>}, {pipeline_mode = #tpu.pipeline_mode<synchronous>, transform_indices = @transform_8, window_bounds = array<i64: 8, 1>}]} {
    %c0_i32 = arith.constant 0 : i32
    %0 = arith.cmpi eq, %arg0, %c0_i32 : i32
    %1 = arith.extui %0 : i1 to i32
    %c0_i32_0 = arith.constant 0 : i32
    %2 = arith.cmpi ne, %1, %c0_i32_0 : i32
    scf.if %2 {
      %cst_109 = arith.constant 0x7F800000 : f32
      %392 = vector.broadcast %cst_109 : f32 to vector<16x128xf32>
      %c0_110 = arith.constant 0 : index
      %c0_111 = arith.constant 0 : index
      %393 = vector.load %arg10[%c0_110, %c0_111] : memref<16x256xf32, #tpu.memory_space<vmem>>, vector<16x128xf32>
      tpu.vector_store %arg10[%c0_110, %c0_111], %392 {strides = array<i32>} : memref<16x256xf32, #tpu.memory_space<vmem>>, vector<16x128xf32>,
    } else {
    }
    %c0 = arith.constant 0 : index
    %c0_1 = arith.constant 0 : index
    %3 = vector.load %arg1[%c0, %c0_1] : memref<8x4xbf16, #tpu.memory_space<vmem>>, vector<8x4xbf16>
    %c0_2 = arith.constant 0 : index
    %c0_3 = arith.constant 0 : index
    %4 = vector.load %arg2[%c0_2, %c0_3] : memref<4x128xbf16, #tpu.memory_space<vmem>>, vector<4x128xbf16>
    %c0_4 = arith.constant 0 : index
    %c0_5 = arith.constant 0 : index
    %5 = vector.load %arg3[%c0_4, %c0_5] : memref<1x128xf32, #tpu.memory_space<vmem>>, vector<1x128xf32>
    %6 = arith.extf %3 : vector<8x4xbf16> to vector<8x4xf32>
    %7 = arith.mulf %6, %6 : vector<8x4xf32>
    %cst = arith.constant dense<0.000000e+00> : vector<8xf32>
    %8 = vector.multi_reduction <add>, %7, %cst [1] : vector<8x4xf32> to vector<8xf32>
    %9 = vector.shape_cast %8 : vector<8xf32> to vector<8x1xf32>
    %cst_6 = arith.constant dense<0.000000e+00> : vector<8x128xf32>
    %10 = tpu.matmul %3, %4, %cst_6 {dimension_numbers = #tpu.dot_dimension_numbers<[1], [0], [0], [1], [0, 0, 1, 1], [], []>} : vector<8x4xbf16>, vector<4x128xbf16>, vector<8x128xf32> -> vector<8x128xf32>
    %11 = vector.broadcast %9 : vector<8x1xf32> to vector<8x128xf32>
    %12 = vector.broadcast %5 : vector<1x128xf32> to vector<8x128xf32>
    %13 = arith.addf %11, %12 : vector<8x128xf32>
    %cst_7 = arith.constant 2.000000e+00 : f32
    %14 = vector.broadcast %cst_7 : f32 to vector<8x128xf32>
    %15 = arith.mulf %14, %10 : vector<8x128xf32>
    %16 = arith.subf %13, %15 : vector<8x128xf32>
    %cst_8 = arith.constant 9.99999996E-13 : f32
    %17 = vector.broadcast %cst_8 : f32 to vector<8x128xf32>
    %18 = arith.maximumf %16, %17 : vector<8x128xf32>
    %c0_9 = arith.constant 0 : index
    %c128 = arith.constant 128 : index
    %19 = vector.load %arg10[%c0_9, %c128] : memref<16x256xf32, #tpu.memory_space<vmem>>, vector<8x128xf32>
    tpu.vector_store %arg10[%c0_9, %c128], %18 {strides = array<i32>} : memref<16x256xf32, #tpu.memory_space<vmem>>, vector<8x128xf32>,
    %c0_10 = arith.constant 0 : index
    %c0_11 = arith.constant 0 : index
    %20 = vector.load %arg4[%c0_10, %c0_11] : memref<8x8xbf16, #tpu.memory_space<vmem>>, vector<8x8xbf16>
    %c0_12 = arith.constant 0 : index
    %c0_13 = arith.constant 0 : index
    %21 = vector.load %arg5[%c0_12, %c0_13] : memref<8x128xbf16, #tpu.memory_space<vmem>>, vector<8x128xbf16>
    %c0_14 = arith.constant 0 : index
    %c0_15 = arith.constant 0 : index
    %22 = vector.load %arg6[%c0_14, %c0_15] : memref<1x128xf32, #tpu.memory_space<vmem>>, vector<1x128xf32>
    %23 = arith.extf %20 : vector<8x8xbf16> to vector<8x8xf32>
    %24 = arith.mulf %23, %23 : vector<8x8xf32>
    %cst_16 = arith.constant dense<0.000000e+00> : vector<8xf32>
    %25 = vector.multi_reduction <add>, %24, %cst_16 [1] : vector<8x8xf32> to vector<8xf32>
    %26 = vector.shape_cast %25 : vector<8xf32> to vector<8x1xf32>
    %cst_17 = arith.constant dense<0.000000e+00> : vector<8x128xf32>
    %27 = tpu.matmul %20, %21, %cst_17 {dimension_numbers = #tpu.dot_dimension_numbers<[1], [0], [0], [1], [0, 0, 1, 1], [], []>} : vector<8x8xbf16>, vector<8x128xbf16>, vector<8x128xf32> -> vector<8x128xf32>
    %28 = vector.broadcast %26 : vector<8x1xf32> to vector<8x128xf32>
    %29 = vector.broadcast %22 : vector<1x128xf32> to vector<8x128xf32>
    %30 = arith.addf %28, %29 : vector<8x128xf32>
    %cst_18 = arith.constant 2.000000e+00 : f32
    %31 = vector.broadcast %cst_18 : f32 to vector<8x128xf32>
    %32 = arith.mulf %31, %27 : vector<8x128xf32>
    %33 = arith.subf %30, %32 : vector<8x128xf32>
    %cst_19 = arith.constant 9.99999996E-13 : f32
    %34 = vector.broadcast %cst_19 : f32 to vector<8x128xf32>
    %35 = arith.maximumf %33, %34 : vector<8x128xf32>
    %c8 = arith.constant 8 : index
    %c128_20 = arith.constant 128 : index
    %36 = vector.load %arg10[%c8, %c128_20] : memref<16x256xf32, #tpu.memory_space<vmem>>, vector<8x128xf32>
    tpu.vector_store %arg10[%c8, %c128_20], %35 {strides = array<i32>} : memref<16x256xf32, #tpu.memory_space<vmem>>, vector<8x128xf32>,
    %c0_21 = arith.constant 0 : index
    %c0_22 = arith.constant 0 : index
    %37 = vector.load %arg10[%c0_21, %c0_22] : memref<16x256xf32, #tpu.memory_space<vmem>>, vector<16x256xf32>
    %38 = tpu.iota {dimensions = array<i32: 1>} : vector<16x256xi32>
    %39 = tpu.iota {dimensions = array<i32: 1>} : vector<16x128xi32>
    %cst_23 = arith.constant 0x7F800000 : f32
    %40 = vector.broadcast %cst_23 : f32 to vector<16x128xf32>
    %cst_24 = arith.constant dense<0x7F800000> : vector<16xf32>
    %41 = vector.multi_reduction <minimumf>, %37, %cst_24 [1] : vector<16x256xf32> to vector<16xf32>
    %42 = vector.shape_cast %41 : vector<16xf32> to vector<16x1xf32>
    %43 = vector.broadcast %42 : vector<16x1xf32> to vector<16x256xf32>
    %44 = arith.cmpf oeq, %37, %43 : vector<16x256xf32>
    %c256_i32 = arith.constant 256 : i32
    %45 = vector.broadcast %c256_i32 : i32 to vector<16x256xi32>
    %46 = arith.select %44, %38, %45 : vector<16x256xi1>, vector<16x256xi32>
    %cst_25 = arith.constant dense<2147483647> : vector<16xi32>
    %47 = vector.multi_reduction <minsi>, %46, %cst_25 [1] : vector<16x256xi32> to vector<16xi32>
    %48 = vector.shape_cast %47 : vector<16xi32> to vector<16x1xi32>
    %49 = vector.broadcast %48 : vector<16x1xi32> to vector<16x256xi32>
    %50 = arith.cmpi eq, %38, %49 : vector<16x256xi32>
    %cst_26 = arith.constant 0x7F800000 : f32
    %51 = vector.broadcast %cst_26 : f32 to vector<16x256xf32>
    %52 = arith.select %50, %51, %37 : vector<16x256xi1>, vector<16x256xf32>
    %c0_i32_27 = arith.constant 0 : i32
    %53 = vector.broadcast %c0_i32_27 : i32 to vector<16x128xi32>
    %54 = arith.cmpi eq, %39, %53 : vector<16x128xi32>
    %55 = vector.shape_cast %42 : vector<16x1xf32> to vector<16x1xf32>
    %56 = vector.broadcast %55 : vector<16x1xf32> to vector<16x128xf32>
    %57 = arith.select %54, %56, %40 : vector<16x128xi1>, vector<16x128xf32>
    %cst_28 = arith.constant dense<0x7F800000> : vector<16xf32>
    %58 = vector.multi_reduction <minimumf>, %52, %cst_28 [1] : vector<16x256xf32> to vector<16xf32>
    %59 = vector.shape_cast %58 : vector<16xf32> to vector<16x1xf32>
    %60 = vector.broadcast %59 : vector<16x1xf32> to vector<16x256xf32>
    %61 = arith.cmpf oeq, %52, %60 : vector<16x256xf32>
    %c256_i32_29 = arith.constant 256 : i32
    %62 = vector.broadcast %c256_i32_29 : i32 to vector<16x256xi32>
    %63 = arith.select %61, %38, %62 : vector<16x256xi1>, vector<16x256xi32>
    %cst_30 = arith.constant dense<2147483647> : vector<16xi32>
    %64 = vector.multi_reduction <minsi>, %63, %cst_30 [1] : vector<16x256xi32> to vector<16xi32>
    %65 = vector.shape_cast %64 : vector<16xi32> to vector<16x1xi32>
    %66 = vector.broadcast %65 : vector<16x1xi32> to vector<16x256xi32>
    %67 = arith.cmpi eq, %38, %66 : vector<16x256xi32>
    %cst_31 = arith.constant 0x7F800000 : f32
    %68 = vector.broadcast %cst_31 : f32 to vector<16x256xf32>
    %69 = arith.select %67, %68, %52 : vector<16x256xi1>, vector<16x256xf32>
    %c1_i32 = arith.constant 1 : i32
    %70 = vector.broadcast %c1_i32 : i32 to vector<16x128xi32>
    %71 = arith.cmpi eq, %39, %70 : vector<16x128xi32>
    %72 = vector.shape_cast %59 : vector<16x1xf32> to vector<16x1xf32>
    %73 = vector.broadcast %72 : vector<16x1xf32> to vector<16x128xf32>
    %74 = arith.select %71, %73, %57 : vector<16x128xi1>, vector<16x128xf32>
    %cst_32 = arith.constant dense<0x7F800000> : vector<16xf32>
    %75 = vector.multi_reduction <minimumf>, %69, %cst_32 [1] : vector<16x256xf32> to vector<16xf32>
    %76 = vector.shape_cast %75 : vector<16xf32> to vector<16x1xf32>
    %77 = vector.broadcast %76 : vector<16x1xf32> to vector<16x256xf32>
    %78 = arith.cmpf oeq, %69, %77 : vector<16x256xf32>
    %c256_i32_33 = arith.constant 256 : i32
    %79 = vector.broadcast %c256_i32_33 : i32 to vector<16x256xi32>
    %80 = arith.select %78, %38, %79 : vector<16x256xi1>, vector<16x256xi32>
    %cst_34 = arith.constant dense<2147483647> : vector<16xi32>
    %81 = vector.multi_reduction <minsi>, %80, %cst_34 [1] : vector<16x256xi32> to vector<16xi32>
    %82 = vector.shape_cast %81 : vector<16xi32> to vector<16x1xi32>
    %83 = vector.broadcast %82 : vector<16x1xi32> to vector<16x256xi32>
    %84 = arith.cmpi eq, %38, %83 : vector<16x256xi32>
    %cst_35 = arith.constant 0x7F800000 : f32
    %85 = vector.broadcast %cst_35 : f32 to vector<16x256xf32>
    %86 = arith.select %84, %85, %69 : vector<16x256xi1>, vector<16x256xf32>
    %c2_i32 = arith.constant 2 : i32
    %87 = vector.broadcast %c2_i32 : i32 to vector<16x128xi32>
    %88 = arith.cmpi eq, %39, %87 : vector<16x128xi32>
    %89 = vector.shape_cast %76 : vector<16x1xf32> to vector<16x1xf32>
    %90 = vector.broadcast %89 : vector<16x1xf32> to vector<16x128xf32>
    %91 = arith.select %88, %90, %74 : vector<16x128xi1>, vector<16x128xf32>
    %cst_36 = arith.constant dense<0x7F800000> : vector<16xf32>
    %92 = vector.multi_reduction <minimumf>, %86, %cst_36 [1] : vector<16x256xf32> to vector<16xf32>
    %93 = vector.shape_cast %92 : vector<16xf32> to vector<16x1xf32>
    %94 = vector.broadcast %93 : vector<16x1xf32> to vector<16x256xf32>
    %95 = arith.cmpf oeq, %86, %94 : vector<16x256xf32>
    %c256_i32_37 = arith.constant 256 : i32
    %96 = vector.broadcast %c256_i32_37 : i32 to vector<16x256xi32>
    %97 = arith.select %95, %38, %96 : vector<16x256xi1>, vector<16x256xi32>
    %cst_38 = arith.constant dense<2147483647> : vector<16xi32>
    %98 = vector.multi_reduction <minsi>, %97, %cst_38 [1] : vector<16x256xi32> to vector<16xi32>
    %99 = vector.shape_cast %98 : vector<16xi32> to vector<16x1xi32>
    %100 = vector.broadcast %99 : vector<16x1xi32> to vector<16x256xi32>
    %101 = arith.cmpi eq, %38, %100 : vector<16x256xi32>
    %cst_39 = arith.constant 0x7F800000 : f32
    %102 = vector.broadcast %cst_39 : f32 to vector<16x256xf32>
    %103 = arith.select %101, %102, %86 : vector<16x256xi1>, vector<16x256xf32>
    %c3_i32 = arith.constant 3 : i32
    %104 = vector.broadcast %c3_i32 : i32 to vector<16x128xi32>
    %105 = arith.cmpi eq, %39, %104 : vector<16x128xi32>
    %106 = vector.shape_cast %93 : vector<16x1xf32> to vector<16x1xf32>
    %107 = vector.broadcast %106 : vector<16x1xf32> to vector<16x128xf32>
    %108 = arith.select %105, %107, %91 : vector<16x128xi1>, vector<16x128xf32>
    %cst_40 = arith.constant dense<0x7F800000> : vector<16xf32>
    %109 = vector.multi_reduction <minimumf>, %103, %cst_40 [1] : vector<16x256xf32> to vector<16xf32>
    %110 = vector.shape_cast %109 : vector<16xf32> to vector<16x1xf32>
    %111 = vector.broadcast %110 : vector<16x1xf32> to vector<16x256xf32>
    %112 = arith.cmpf oeq, %103, %111 : vector<16x256xf32>
    %c256_i32_41 = arith.constant 256 : i32
    %113 = vector.broadcast %c256_i32_41 : i32 to vector<16x256xi32>
    %114 = arith.select %112, %38, %113 : vector<16x256xi1>, vector<16x256xi32>
    %cst_42 = arith.constant dense<2147483647> : vector<16xi32>
    %115 = vector.multi_reduction <minsi>, %114, %cst_42 [1] : vector<16x256xi32> to vector<16xi32>
    %116 = vector.shape_cast %115 : vector<16xi32> to vector<16x1xi32>
    %117 = vector.broadcast %116 : vector<16x1xi32> to vector<16x256xi32>
    %118 = arith.cmpi eq, %38, %117 : vector<16x256xi32>
    %cst_43 = arith.constant 0x7F800000 : f32
    %119 = vector.broadcast %cst_43 : f32 to vector<16x256xf32>
    %120 = arith.select %118, %119, %103 : vector<16x256xi1>, vector<16x256xf32>
    %c4_i32 = arith.constant 4 : i32
    %121 = vector.broadcast %c4_i32 : i32 to vector<16x128xi32>
    %122 = arith.cmpi eq, %39, %121 : vector<16x128xi32>
    %123 = vector.shape_cast %110 : vector<16x1xf32> to vector<16x1xf32>
    %124 = vector.broadcast %123 : vector<16x1xf32> to vector<16x128xf32>
    %125 = arith.select %122, %124, %108 : vector<16x128xi1>, vector<16x128xf32>
    %cst_44 = arith.constant dense<0x7F800000> : vector<16xf32>
    %126 = vector.multi_reduction <minimumf>, %120, %cst_44 [1] : vector<16x256xf32> to vector<16xf32>
    %127 = vector.shape_cast %126 : vector<16xf32> to vector<16x1xf32>
    %128 = vector.broadcast %127 : vector<16x1xf32> to vector<16x256xf32>
    %129 = arith.cmpf oeq, %120, %128 : vector<16x256xf32>
    %c256_i32_45 = arith.constant 256 : i32
    %130 = vector.broadcast %c256_i32_45 : i32 to vector<16x256xi32>
    %131 = arith.select %129, %38, %130 : vector<16x256xi1>, vector<16x256xi32>
    %cst_46 = arith.constant dense<2147483647> : vector<16xi32>
    %132 = vector.multi_reduction <minsi>, %131, %cst_46 [1] : vector<16x256xi32> to vector<16xi32>
    %133 = vector.shape_cast %132 : vector<16xi32> to vector<16x1xi32>
    %134 = vector.broadcast %133 : vector<16x1xi32> to vector<16x256xi32>
    %135 = arith.cmpi eq, %38, %134 : vector<16x256xi32>
    %cst_47 = arith.constant 0x7F800000 : f32
    %136 = vector.broadcast %cst_47 : f32 to vector<16x256xf32>
    %137 = arith.select %135, %136, %120 : vector<16x256xi1>, vector<16x256xf32>
    %c5_i32 = arith.constant 5 : i32
    %138 = vector.broadcast %c5_i32 : i32 to vector<16x128xi32>
    %139 = arith.cmpi eq, %39, %138 : vector<16x128xi32>
    %140 = vector.shape_cast %127 : vector<16x1xf32> to vector<16x1xf32>
    %141 = vector.broadcast %140 : vector<16x1xf32> to vector<16x128xf32>
    %142 = arith.select %139, %141, %125 : vector<16x128xi1>, vector<16x128xf32>
    %cst_48 = arith.constant dense<0x7F800000> : vector<16xf32>
    %143 = vector.multi_reduction <minimumf>, %137, %cst_48 [1] : vector<16x256xf32> to vector<16xf32>
    %144 = vector.shape_cast %143 : vector<16xf32> to vector<16x1xf32>
    %145 = vector.broadcast %144 : vector<16x1xf32> to vector<16x256xf32>
    %146 = arith.cmpf oeq, %137, %145 : vector<16x256xf32>
    %c256_i32_49 = arith.constant 256 : i32
    %147 = vector.broadcast %c256_i32_49 : i32 to vector<16x256xi32>
    %148 = arith.select %146, %38, %147 : vector<16x256xi1>, vector<16x256xi32>
    %cst_50 = arith.constant dense<2147483647> : vector<16xi32>
    %149 = vector.multi_reduction <minsi>, %148, %cst_50 [1] : vector<16x256xi32> to vector<16xi32>
    %150 = vector.shape_cast %149 : vector<16xi32> to vector<16x1xi32>
    %151 = vector.broadcast %150 : vector<16x1xi32> to vector<16x256xi32>
    %152 = arith.cmpi eq, %38, %151 : vector<16x256xi32>
    %cst_51 = arith.constant 0x7F800000 : f32
    %153 = vector.broadcast %cst_51 : f32 to vector<16x256xf32>
    %154 = arith.select %152, %153, %137 : vector<16x256xi1>, vector<16x256xf32>
    %c6_i32 = arith.constant 6 : i32
    %155 = vector.broadcast %c6_i32 : i32 to vector<16x128xi32>
    %156 = arith.cmpi eq, %39, %155 : vector<16x128xi32>
    %157 = vector.shape_cast %144 : vector<16x1xf32> to vector<16x1xf32>
    %158 = vector.broadcast %157 : vector<16x1xf32> to vector<16x128xf32>
    %159 = arith.select %156, %158, %142 : vector<16x128xi1>, vector<16x128xf32>
    %cst_52 = arith.constant dense<0x7F800000> : vector<16xf32>
    %160 = vector.multi_reduction <minimumf>, %154, %cst_52 [1] : vector<16x256xf32> to vector<16xf32>
    %161 = vector.shape_cast %160 : vector<16xf32> to vector<16x1xf32>
    %162 = vector.broadcast %161 : vector<16x1xf32> to vector<16x256xf32>
    %163 = arith.cmpf oeq, %154, %162 : vector<16x256xf32>
    %c256_i32_53 = arith.constant 256 : i32
    %164 = vector.broadcast %c256_i32_53 : i32 to vector<16x256xi32>
    %165 = arith.select %163, %38, %164 : vector<16x256xi1>, vector<16x256xi32>
    %cst_54 = arith.constant dense<2147483647> : vector<16xi32>
    %166 = vector.multi_reduction <minsi>, %165, %cst_54 [1] : vector<16x256xi32> to vector<16xi32>
    %167 = vector.shape_cast %166 : vector<16xi32> to vector<16x1xi32>
    %168 = vector.broadcast %167 : vector<16x1xi32> to vector<16x256xi32>
    %169 = arith.cmpi eq, %38, %168 : vector<16x256xi32>
    %cst_55 = arith.constant 0x7F800000 : f32
    %170 = vector.broadcast %cst_55 : f32 to vector<16x256xf32>
    %171 = arith.select %169, %170, %154 : vector<16x256xi1>, vector<16x256xf32>
    %c7_i32 = arith.constant 7 : i32
    %172 = vector.broadcast %c7_i32 : i32 to vector<16x128xi32>
    %173 = arith.cmpi eq, %39, %172 : vector<16x128xi32>
    %174 = vector.shape_cast %161 : vector<16x1xf32> to vector<16x1xf32>
    %175 = vector.broadcast %174 : vector<16x1xf32> to vector<16x128xf32>
    %176 = arith.select %173, %175, %159 : vector<16x128xi1>, vector<16x128xf32>
    %cst_56 = arith.constant dense<0x7F800000> : vector<16xf32>
    %177 = vector.multi_reduction <minimumf>, %171, %cst_56 [1] : vector<16x256xf32> to vector<16xf32>
    %178 = vector.shape_cast %177 : vector<16xf32> to vector<16x1xf32>
    %179 = vector.broadcast %178 : vector<16x1xf32> to vector<16x256xf32>
    %180 = arith.cmpf oeq, %171, %179 : vector<16x256xf32>
    %c256_i32_57 = arith.constant 256 : i32
    %181 = vector.broadcast %c256_i32_57 : i32 to vector<16x256xi32>
    %182 = arith.select %180, %38, %181 : vector<16x256xi1>, vector<16x256xi32>
    %cst_58 = arith.constant dense<2147483647> : vector<16xi32>
    %183 = vector.multi_reduction <minsi>, %182, %cst_58 [1] : vector<16x256xi32> to vector<16xi32>
    %184 = vector.shape_cast %183 : vector<16xi32> to vector<16x1xi32>
    %185 = vector.broadcast %184 : vector<16x1xi32> to vector<16x256xi32>
    %186 = arith.cmpi eq, %38, %185 : vector<16x256xi32>
    %cst_59 = arith.constant 0x7F800000 : f32
    %187 = vector.broadcast %cst_59 : f32 to vector<16x256xf32>
    %188 = arith.select %186, %187, %171 : vector<16x256xi1>, vector<16x256xf32>
    %c8_i32 = arith.constant 8 : i32
    %189 = vector.broadcast %c8_i32 : i32 to vector<16x128xi32>
    %190 = arith.cmpi eq, %39, %189 : vector<16x128xi32>
    %191 = vector.shape_cast %178 : vector<16x1xf32> to vector<16x1xf32>
    %192 = vector.broadcast %191 : vector<16x1xf32> to vector<16x128xf32>
    %193 = arith.select %190, %192, %176 : vector<16x128xi1>, vector<16x128xf32>
    %cst_60 = arith.constant dense<0x7F800000> : vector<16xf32>
    %194 = vector.multi_reduction <minimumf>, %188, %cst_60 [1] : vector<16x256xf32> to vector<16xf32>
    %195 = vector.shape_cast %194 : vector<16xf32> to vector<16x1xf32>
    %196 = vector.broadcast %195 : vector<16x1xf32> to vector<16x256xf32>
    %197 = arith.cmpf oeq, %188, %196 : vector<16x256xf32>
    %c256_i32_61 = arith.constant 256 : i32
    %198 = vector.broadcast %c256_i32_61 : i32 to vector<16x256xi32>
    %199 = arith.select %197, %38, %198 : vector<16x256xi1>, vector<16x256xi32>
    %cst_62 = arith.constant dense<2147483647> : vector<16xi32>
    %200 = vector.multi_reduction <minsi>, %199, %cst_62 [1] : vector<16x256xi32> to vector<16xi32>
    %201 = vector.shape_cast %200 : vector<16xi32> to vector<16x1xi32>
    %202 = vector.broadcast %201 : vector<16x1xi32> to vector<16x256xi32>
    %203 = arith.cmpi eq, %38, %202 : vector<16x256xi32>
    %cst_63 = arith.constant 0x7F800000 : f32
    %204 = vector.broadcast %cst_63 : f32 to vector<16x256xf32>
    %205 = arith.select %203, %204, %188 : vector<16x256xi1>, vector<16x256xf32>
    %c9_i32 = arith.constant 9 : i32
    %206 = vector.broadcast %c9_i32 : i32 to vector<16x128xi32>
    %207 = arith.cmpi eq, %39, %206 : vector<16x128xi32>
    %208 = vector.shape_cast %195 : vector<16x1xf32> to vector<16x1xf32>
    %209 = vector.broadcast %208 : vector<16x1xf32> to vector<16x128xf32>
    %210 = arith.select %207, %209, %193 : vector<16x128xi1>, vector<16x128xf32>
    %cst_64 = arith.constant dense<0x7F800000> : vector<16xf32>
    %211 = vector.multi_reduction <minimumf>, %205, %cst_64 [1] : vector<16x256xf32> to vector<16xf32>
    %212 = vector.shape_cast %211 : vector<16xf32> to vector<16x1xf32>
    %213 = vector.broadcast %212 : vector<16x1xf32> to vector<16x256xf32>
    %214 = arith.cmpf oeq, %205, %213 : vector<16x256xf32>
    %c256_i32_65 = arith.constant 256 : i32
    %215 = vector.broadcast %c256_i32_65 : i32 to vector<16x256xi32>
    %216 = arith.select %214, %38, %215 : vector<16x256xi1>, vector<16x256xi32>
    %cst_66 = arith.constant dense<2147483647> : vector<16xi32>
    %217 = vector.multi_reduction <minsi>, %216, %cst_66 [1] : vector<16x256xi32> to vector<16xi32>
    %218 = vector.shape_cast %217 : vector<16xi32> to vector<16x1xi32>
    %219 = vector.broadcast %218 : vector<16x1xi32> to vector<16x256xi32>
    %220 = arith.cmpi eq, %38, %219 : vector<16x256xi32>
    %cst_67 = arith.constant 0x7F800000 : f32
    %221 = vector.broadcast %cst_67 : f32 to vector<16x256xf32>
    %222 = arith.select %220, %221, %205 : vector<16x256xi1>, vector<16x256xf32>
    %c10_i32 = arith.constant 10 : i32
    %223 = vector.broadcast %c10_i32 : i32 to vector<16x128xi32>
    %224 = arith.cmpi eq, %39, %223 : vector<16x128xi32>
    %225 = vector.shape_cast %212 : vector<16x1xf32> to vector<16x1xf32>
    %226 = vector.broadcast %225 : vector<16x1xf32> to vector<16x128xf32>
    %227 = arith.select %224, %226, %210 : vector<16x128xi1>, vector<16x128xf32>
    %cst_68 = arith.constant dense<0x7F800000> : vector<16xf32>
    %228 = vector.multi_reduction <minimumf>, %222, %cst_68 [1] : vector<16x256xf32> to vector<16xf32>
    %229 = vector.shape_cast %228 : vector<16xf32> to vector<16x1xf32>
    %230 = vector.broadcast %229 : vector<16x1xf32> to vector<16x256xf32>
    %231 = arith.cmpf oeq, %222, %230 : vector<16x256xf32>
    %c256_i32_69 = arith.constant 256 : i32
    %232 = vector.broadcast %c256_i32_69 : i32 to vector<16x256xi32>
    %233 = arith.select %231, %38, %232 : vector<16x256xi1>, vector<16x256xi32>
    %cst_70 = arith.constant dense<2147483647> : vector<16xi32>
    %234 = vector.multi_reduction <minsi>, %233, %cst_70 [1] : vector<16x256xi32> to vector<16xi32>
    %235 = vector.shape_cast %234 : vector<16xi32> to vector<16x1xi32>
    %236 = vector.broadcast %235 : vector<16x1xi32> to vector<16x256xi32>
    %237 = arith.cmpi eq, %38, %236 : vector<16x256xi32>
    %cst_71 = arith.constant 0x7F800000 : f32
    %238 = vector.broadcast %cst_71 : f32 to vector<16x256xf32>
    %239 = arith.select %237, %238, %222 : vector<16x256xi1>, vector<16x256xf32>
    %c11_i32 = arith.constant 11 : i32
    %240 = vector.broadcast %c11_i32 : i32 to vector<16x128xi32>
    %241 = arith.cmpi eq, %39, %240 : vector<16x128xi32>
    %242 = vector.shape_cast %229 : vector<16x1xf32> to vector<16x1xf32>
    %243 = vector.broadcast %242 : vector<16x1xf32> to vector<16x128xf32>
    %244 = arith.select %241, %243, %227 : vector<16x128xi1>, vector<16x128xf32>
    %cst_72 = arith.constant dense<0x7F800000> : vector<16xf32>
    %245 = vector.multi_reduction <minimumf>, %239, %cst_72 [1] : vector<16x256xf32> to vector<16xf32>
    %246 = vector.shape_cast %245 : vector<16xf32> to vector<16x1xf32>
    %247 = vector.broadcast %246 : vector<16x1xf32> to vector<16x256xf32>
    %248 = arith.cmpf oeq, %239, %247 : vector<16x256xf32>
    %c256_i32_73 = arith.constant 256 : i32
    %249 = vector.broadcast %c256_i32_73 : i32 to vector<16x256xi32>
    %250 = arith.select %248, %38, %249 : vector<16x256xi1>, vector<16x256xi32>
    %cst_74 = arith.constant dense<2147483647> : vector<16xi32>
    %251 = vector.multi_reduction <minsi>, %250, %cst_74 [1] : vector<16x256xi32> to vector<16xi32>
    %252 = vector.shape_cast %251 : vector<16xi32> to vector<16x1xi32>
    %253 = vector.broadcast %252 : vector<16x1xi32> to vector<16x256xi32>
    %254 = arith.cmpi eq, %38, %253 : vector<16x256xi32>
    %cst_75 = arith.constant 0x7F800000 : f32
    %255 = vector.broadcast %cst_75 : f32 to vector<16x256xf32>
    %256 = arith.select %254, %255, %239 : vector<16x256xi1>, vector<16x256xf32>
    %c12_i32 = arith.constant 12 : i32
    %257 = vector.broadcast %c12_i32 : i32 to vector<16x128xi32>
    %258 = arith.cmpi eq, %39, %257 : vector<16x128xi32>
    %259 = vector.shape_cast %246 : vector<16x1xf32> to vector<16x1xf32>
    %260 = vector.broadcast %259 : vector<16x1xf32> to vector<16x128xf32>
    %261 = arith.select %258, %260, %244 : vector<16x128xi1>, vector<16x128xf32>
    %cst_76 = arith.constant dense<0x7F800000> : vector<16xf32>
    %262 = vector.multi_reduction <minimumf>, %256, %cst_76 [1] : vector<16x256xf32> to vector<16xf32>
    %263 = vector.shape_cast %262 : vector<16xf32> to vector<16x1xf32>
    %264 = vector.broadcast %263 : vector<16x1xf32> to vector<16x256xf32>
    %265 = arith.cmpf oeq, %256, %264 : vector<16x256xf32>
    %c256_i32_77 = arith.constant 256 : i32
    %266 = vector.broadcast %c256_i32_77 : i32 to vector<16x256xi32>
    %267 = arith.select %265, %38, %266 : vector<16x256xi1>, vector<16x256xi32>
    %cst_78 = arith.constant dense<2147483647> : vector<16xi32>
    %268 = vector.multi_reduction <minsi>, %267, %cst_78 [1] : vector<16x256xi32> to vector<16xi32>
    %269 = vector.shape_cast %268 : vector<16xi32> to vector<16x1xi32>
    %270 = vector.broadcast %269 : vector<16x1xi32> to vector<16x256xi32>
    %271 = arith.cmpi eq, %38, %270 : vector<16x256xi32>
    %cst_79 = arith.constant 0x7F800000 : f32
    %272 = vector.broadcast %cst_79 : f32 to vector<16x256xf32>
    %273 = arith.select %271, %272, %256 : vector<16x256xi1>, vector<16x256xf32>
    %c13_i32 = arith.constant 13 : i32
    %274 = vector.broadcast %c13_i32 : i32 to vector<16x128xi32>
    %275 = arith.cmpi eq, %39, %274 : vector<16x128xi32>
    %276 = vector.shape_cast %263 : vector<16x1xf32> to vector<16x1xf32>
    %277 = vector.broadcast %276 : vector<16x1xf32> to vector<16x128xf32>
    %278 = arith.select %275, %277, %261 : vector<16x128xi1>, vector<16x128xf32>
    %cst_80 = arith.constant dense<0x7F800000> : vector<16xf32>
    %279 = vector.multi_reduction <minimumf>, %273, %cst_80 [1] : vector<16x256xf32> to vector<16xf32>
    %280 = vector.shape_cast %279 : vector<16xf32> to vector<16x1xf32>
    %281 = vector.broadcast %280 : vector<16x1xf32> to vector<16x256xf32>
    %282 = arith.cmpf oeq, %273, %281 : vector<16x256xf32>
    %c256_i32_81 = arith.constant 256 : i32
    %283 = vector.broadcast %c256_i32_81 : i32 to vector<16x256xi32>
    %284 = arith.select %282, %38, %283 : vector<16x256xi1>, vector<16x256xi32>
    %cst_82 = arith.constant dense<2147483647> : vector<16xi32>
    %285 = vector.multi_reduction <minsi>, %284, %cst_82 [1] : vector<16x256xi32> to vector<16xi32>
    %286 = vector.shape_cast %285 : vector<16xi32> to vector<16x1xi32>
    %287 = vector.broadcast %286 : vector<16x1xi32> to vector<16x256xi32>
    %288 = arith.cmpi eq, %38, %287 : vector<16x256xi32>
    %cst_83 = arith.constant 0x7F800000 : f32
    %289 = vector.broadcast %cst_83 : f32 to vector<16x256xf32>
    %290 = arith.select %288, %289, %273 : vector<16x256xi1>, vector<16x256xf32>
    %c14_i32 = arith.constant 14 : i32
    %291 = vector.broadcast %c14_i32 : i32 to vector<16x128xi32>
    %292 = arith.cmpi eq, %39, %291 : vector<16x128xi32>
    %293 = vector.shape_cast %280 : vector<16x1xf32> to vector<16x1xf32>
    %294 = vector.broadcast %293 : vector<16x1xf32> to vector<16x128xf32>
    %295 = arith.select %292, %294, %278 : vector<16x128xi1>, vector<16x128xf32>
    %cst_84 = arith.constant dense<0x7F800000> : vector<16xf32>
    %296 = vector.multi_reduction <minimumf>, %290, %cst_84 [1] : vector<16x256xf32> to vector<16xf32>
    %297 = vector.shape_cast %296 : vector<16xf32> to vector<16x1xf32>
    %298 = vector.broadcast %297 : vector<16x1xf32> to vector<16x256xf32>
    %299 = arith.cmpf oeq, %290, %298 : vector<16x256xf32>
    %c256_i32_85 = arith.constant 256 : i32
    %300 = vector.broadcast %c256_i32_85 : i32 to vector<16x256xi32>
    %301 = arith.select %299, %38, %300 : vector<16x256xi1>, vector<16x256xi32>
    %cst_86 = arith.constant dense<2147483647> : vector<16xi32>
    %302 = vector.multi_reduction <minsi>, %301, %cst_86 [1] : vector<16x256xi32> to vector<16xi32>
    %303 = vector.shape_cast %302 : vector<16xi32> to vector<16x1xi32>
    %304 = vector.broadcast %303 : vector<16x1xi32> to vector<16x256xi32>
    %305 = arith.cmpi eq, %38, %304 : vector<16x256xi32>
    %cst_87 = arith.constant 0x7F800000 : f32
    %306 = vector.broadcast %cst_87 : f32 to vector<16x256xf32>
    %307 = arith.select %305, %306, %290 : vector<16x256xi1>, vector<16x256xf32>
    %c15_i32 = arith.constant 15 : i32
    %308 = vector.broadcast %c15_i32 : i32 to vector<16x128xi32>
    %309 = arith.cmpi eq, %39, %308 : vector<16x128xi32>
    %310 = vector.shape_cast %297 : vector<16x1xf32> to vector<16x1xf32>
    %311 = vector.broadcast %310 : vector<16x1xf32> to vector<16x128xf32>
    %312 = arith.select %309, %311, %295 : vector<16x128xi1>, vector<16x128xf32>
    %cst_88 = arith.constant dense<0x7F800000> : vector<16xf32>
    %313 = vector.multi_reduction <minimumf>, %307, %cst_88 [1] : vector<16x256xf32> to vector<16xf32>
    %314 = vector.shape_cast %313 : vector<16xf32> to vector<16x1xf32>
    %315 = vector.broadcast %314 : vector<16x1xf32> to vector<16x256xf32>
    %316 = arith.cmpf oeq, %307, %315 : vector<16x256xf32>
    %c256_i32_89 = arith.constant 256 : i32
    %317 = vector.broadcast %c256_i32_89 : i32 to vector<16x256xi32>
    %318 = arith.select %316, %38, %317 : vector<16x256xi1>, vector<16x256xi32>
    %cst_90 = arith.constant dense<2147483647> : vector<16xi32>
    %319 = vector.multi_reduction <minsi>, %318, %cst_90 [1] : vector<16x256xi32> to vector<16xi32>
    %320 = vector.shape_cast %319 : vector<16xi32> to vector<16x1xi32>
    %321 = vector.broadcast %320 : vector<16x1xi32> to vector<16x256xi32>
    %322 = arith.cmpi eq, %38, %321 : vector<16x256xi32>
    %cst_91 = arith.constant 0x7F800000 : f32
    %323 = vector.broadcast %cst_91 : f32 to vector<16x256xf32>
    %324 = arith.select %322, %323, %307 : vector<16x256xi1>, vector<16x256xf32>
    %c16_i32 = arith.constant 16 : i32
    %325 = vector.broadcast %c16_i32 : i32 to vector<16x128xi32>
    %326 = arith.cmpi eq, %39, %325 : vector<16x128xi32>
    %327 = vector.shape_cast %314 : vector<16x1xf32> to vector<16x1xf32>
    %328 = vector.broadcast %327 : vector<16x1xf32> to vector<16x128xf32>
    %329 = arith.select %326, %328, %312 : vector<16x128xi1>, vector<16x128xf32>
    %cst_92 = arith.constant dense<0x7F800000> : vector<16xf32>
    %330 = vector.multi_reduction <minimumf>, %324, %cst_92 [1] : vector<16x256xf32> to vector<16xf32>
    %331 = vector.shape_cast %330 : vector<16xf32> to vector<16x1xf32>
    %332 = vector.broadcast %331 : vector<16x1xf32> to vector<16x256xf32>
    %333 = arith.cmpf oeq, %324, %332 : vector<16x256xf32>
    %c256_i32_93 = arith.constant 256 : i32
    %334 = vector.broadcast %c256_i32_93 : i32 to vector<16x256xi32>
    %335 = arith.select %333, %38, %334 : vector<16x256xi1>, vector<16x256xi32>
    %cst_94 = arith.constant dense<2147483647> : vector<16xi32>
    %336 = vector.multi_reduction <minsi>, %335, %cst_94 [1] : vector<16x256xi32> to vector<16xi32>
    %337 = vector.shape_cast %336 : vector<16xi32> to vector<16x1xi32>
    %338 = vector.broadcast %337 : vector<16x1xi32> to vector<16x256xi32>
    %339 = arith.cmpi eq, %38, %338 : vector<16x256xi32>
    %cst_95 = arith.constant 0x7F800000 : f32
    %340 = vector.broadcast %cst_95 : f32 to vector<16x256xf32>
    %341 = arith.select %339, %340, %324 : vector<16x256xi1>, vector<16x256xf32>
    %c17_i32 = arith.constant 17 : i32
    %342 = vector.broadcast %c17_i32 : i32 to vector<16x128xi32>
    %343 = arith.cmpi eq, %39, %342 : vector<16x128xi32>
    %344 = vector.shape_cast %331 : vector<16x1xf32> to vector<16x1xf32>
    %345 = vector.broadcast %344 : vector<16x1xf32> to vector<16x128xf32>
    %346 = arith.select %343, %345, %329 : vector<16x128xi1>, vector<16x128xf32>
    %cst_96 = arith.constant dense<0x7F800000> : vector<16xf32>
    %347 = vector.multi_reduction <minimumf>, %341, %cst_96 [1] : vector<16x256xf32> to vector<16xf32>
    %348 = vector.shape_cast %347 : vector<16xf32> to vector<16x1xf32>
    %349 = vector.broadcast %348 : vector<16x1xf32> to vector<16x256xf32>
    %350 = arith.cmpf oeq, %341, %349 : vector<16x256xf32>
    %c256_i32_97 = arith.constant 256 : i32
    %351 = vector.broadcast %c256_i32_97 : i32 to vector<16x256xi32>
    %352 = arith.select %350, %38, %351 : vector<16x256xi1>, vector<16x256xi32>
    %cst_98 = arith.constant dense<2147483647> : vector<16xi32>
    %353 = vector.multi_reduction <minsi>, %352, %cst_98 [1] : vector<16x256xi32> to vector<16xi32>
    %354 = vector.shape_cast %353 : vector<16xi32> to vector<16x1xi32>
    %355 = vector.broadcast %354 : vector<16x1xi32> to vector<16x256xi32>
    %356 = arith.cmpi eq, %38, %355 : vector<16x256xi32>
    %cst_99 = arith.constant 0x7F800000 : f32
    %357 = vector.broadcast %cst_99 : f32 to vector<16x256xf32>
    %358 = arith.select %356, %357, %341 : vector<16x256xi1>, vector<16x256xf32>
    %c18_i32 = arith.constant 18 : i32
    %359 = vector.broadcast %c18_i32 : i32 to vector<16x128xi32>
    %360 = arith.cmpi eq, %39, %359 : vector<16x128xi32>
    %361 = vector.shape_cast %348 : vector<16x1xf32> to vector<16x1xf32>
    %362 = vector.broadcast %361 : vector<16x1xf32> to vector<16x128xf32>
    %363 = arith.select %360, %362, %346 : vector<16x128xi1>, vector<16x128xf32>
    %cst_100 = arith.constant dense<0x7F800000> : vector<16xf32>
    %364 = vector.multi_reduction <minimumf>, %358, %cst_100 [1] : vector<16x256xf32> to vector<16xf32>
    %365 = vector.shape_cast %364 : vector<16xf32> to vector<16x1xf32>
    %366 = vector.broadcast %365 : vector<16x1xf32> to vector<16x256xf32>
    %367 = arith.cmpf oeq, %358, %366 : vector<16x256xf32>
    %c256_i32_101 = arith.constant 256 : i32
    %368 = vector.broadcast %c256_i32_101 : i32 to vector<16x256xi32>
    %369 = arith.select %367, %38, %368 : vector<16x256xi1>, vector<16x256xi32>
    %cst_102 = arith.constant dense<2147483647> : vector<16xi32>
    %370 = vector.multi_reduction <minsi>, %369, %cst_102 [1] : vector<16x256xi32> to vector<16xi32>
    %371 = vector.shape_cast %370 : vector<16xi32> to vector<16x1xi32>
    %372 = vector.broadcast %371 : vector<16x1xi32> to vector<16x256xi32>
    %373 = arith.cmpi eq, %38, %372 : vector<16x256xi32>
    %cst_103 = arith.constant 0x7F800000 : f32
    %374 = vector.broadcast %cst_103 : f32 to vector<16x256xf32>
    %375 = arith.select %373, %374, %358 : vector<16x256xi1>, vector<16x256xf32>
    %c19_i32 = arith.constant 19 : i32
    %376 = vector.broadcast %c19_i32 : i32 to vector<16x128xi32>
    %377 = arith.cmpi eq, %39, %376 : vector<16x128xi32>
    %378 = vector.shape_cast %365 : vector<16x1xf32> to vector<16x1xf32>
    %379 = vector.broadcast %378 : vector<16x1xf32> to vector<16x128xf32>
    %380 = arith.select %377, %379, %363 : vector<16x128xi1>, vector<16x128xf32>
    %cst_104 = arith.constant dense<0x7F800000> : vector<16xf32>
    %381 = vector.multi_reduction <minimumf>, %375, %cst_104 [1] : vector<16x256xf32> to vector<16xf32>
    %382 = vector.shape_cast %381 : vector<16xf32> to vector<16x1xf32>
    %c20_i32 = arith.constant 20 : i32
    %383 = vector.broadcast %c20_i32 : i32 to vector<16x128xi32>
    %384 = arith.cmpi eq, %39, %383 : vector<16x128xi32>
    %385 = vector.shape_cast %382 : vector<16x1xf32> to vector<16x1xf32>
    %386 = vector.broadcast %385 : vector<16x1xf32> to vector<16x128xf32>
    %387 = arith.select %384, %386, %380 : vector<16x128xi1>, vector<16x128xf32>
    %c0_105 = arith.constant 0 : index
    %c0_106 = arith.constant 0 : index
    %388 = vector.load %arg10[%c0_105, %c0_106] : memref<16x256xf32, #tpu.memory_space<vmem>>, vector<16x128xf32>
    tpu.vector_store %arg10[%c0_105, %c0_106], %387 {strides = array<i32>} : memref<16x256xf32, #tpu.memory_space<vmem>>, vector<16x128xf32>,
    %c1_i32_107 = arith.constant 1 : i32
    %389 = arith.cmpi eq, %arg0, %c1_i32_107 : i32
    %390 = arith.extui %389 : i1 to i32
    %c0_i32_108 = arith.constant 0 : i32
    %391 = arith.cmpi ne, %390, %c0_i32_108 : i32
    scf.if %391 {
      %392 = math.log %387 : vector<16x128xf32>
      %c1_i32_109 = arith.constant 1 : i32
      %393 = vector.broadcast %c1_i32_109 : i32 to vector<16x128xi32>
      %394 = arith.cmpi sge, %39, %393 : vector<16x128xi32>
      %c20_i32_110 = arith.constant 20 : i32
      %395 = vector.broadcast %c20_i32_110 : i32 to vector<16x128xi32>
      %396 = arith.cmpi sle, %39, %395 : vector<16x128xi32>
      %397 = arith.andi %394, %396 : vector<16x128xi1>
      %cst_111 = arith.constant 0.000000e+00 : f32
      %398 = vector.broadcast %cst_111 : f32 to vector<16x128xf32>
      %399 = arith.select %397, %392, %398 : vector<16x128xi1>, vector<16x128xf32>
      %cst_112 = arith.constant dense<0.000000e+00> : vector<16xf32>
      %400 = vector.multi_reduction <add>, %399, %cst_112 [1] : vector<16x128xf32> to vector<16xf32>
      %401 = vector.shape_cast %400 : vector<16xf32> to vector<16x1xf32>
      %402 = math.log %382 : vector<16x1xf32>
      %cst_113 = arith.constant 2.000000e+01 : f32
      %403 = vector.broadcast %cst_113 : f32 to vector<16x1xf32>
      %404 = arith.mulf %403, %402 : vector<16x1xf32>
      %405 = arith.subf %401, %404 : vector<16x1xf32>
      %cst_114 = arith.constant -9.99999996E-13 : f32
      %406 = vector.broadcast %cst_114 : f32 to vector<16x1xf32>
      %407 = arith.minimumf %405, %406 : vector<16x1xf32>
      %cst_115 = arith.constant -4.000000e+01 : f32
      %408 = vector.broadcast %cst_115 : f32 to vector<16x1xf32>
      %409 = arith.divf %408, %407 : vector<16x1xf32>
      %c0_116 = arith.constant 0 : index
      %c0_117 = arith.constant 0 : index
      %410 = vector.load %arg7[%c0_116, %c0_117] : memref<16x1xf32, #tpu.memory_space<vmem>>, vector<16x1xf32>
      %411 = arith.mulf %410, %409 : vector<16x1xf32>
      %c0_118 = arith.constant 0 : index
      %c0_119 = arith.constant 0 : index
      %412 = vector.load %arg8[%c0_118, %c0_119] : memref<1x1xf32, #tpu.memory_space<vmem>>, vector<1x1xf32>
      %413 = vector.extract_strided_slice %411 {offsets = [0, 0], sizes = [8, 1], strides = [1, 1]} : vector<16x1xf32> to vector<8x1xf32>
      %414 = vector.broadcast %412 : vector<1x1xf32> to vector<8x1xf32>
      %415 = arith.addf %414, %413 : vector<8x1xf32>
      %416 = vector.extract_strided_slice %411 {offsets = [8, 0], sizes = [8, 1], strides = [1, 1]} : vector<16x1xf32> to vector<8x1xf32>
      %417 = arith.addf %415, %416 : vector<8x1xf32>
      %cst_120 = arith.constant 0.000000e+00 : f32
      %418 = vector.broadcast %cst_120 : f32 to vector<8x1xf32>
      %419 = arith.cmpf oge, %417, %418 : vector<8x1xf32>
      %cst_121 = arith.constant 0.000000e+00 : f32
      %420 = vector.broadcast %cst_121 : f32 to vector<8x1xf32>
      %421 = arith.subf %420, %417 : vector<8x1xf32>
      %422 = arith.select %419, %421, %417 : vector<8x1xi1>, vector<8x1xf32>
      %423 = math.exp %422 : vector<8x1xf32>
      %cst_122 = arith.constant 1.000000e+00 : f32
      %424 = vector.broadcast %cst_122 : f32 to vector<8x1xf32>
      %425 = arith.addf %424, %423 : vector<8x1xf32>
      %cst_123 = arith.constant 1.000000e+00 : f32
      %426 = vector.broadcast %cst_123 : f32 to vector<8x1xf32>
      %427 = arith.divf %426, %425 : vector<8x1xf32>
      %cst_124 = arith.constant 1.000000e+00 : f32
      %428 = vector.broadcast %cst_124 : f32 to vector<8x1xf32>
      %429 = arith.addf %428, %423 : vector<8x1xf32>
      %430 = arith.divf %423, %429 : vector<8x1xf32>
      %431 = arith.select %419, %427, %430 : vector<8x1xi1>, vector<8x1xf32>
      %c0_125 = arith.constant 0 : index
      %c0_126 = arith.constant 0 : index
      %432 = vector.load %arg9[%c0_125, %c0_126] : memref<8x1xf32, #tpu.memory_space<vmem>>, vector<8x1xf32>
      tpu.vector_store %arg9[%c0_125, %c0_126], %431 {strides = array<i32>} : memref<8x1xf32, #tpu.memory_space<vmem>>, vector<8x1xf32>,
    } else {
    }
    return
  }
  func.func @transform_0(%arg0: i32) -> (i32, i32) {
    %c0_i32 = arith.constant 0 : i32
    %c0_i32_0 = arith.constant 0 : i32
    %c0_i32_1 = arith.constant 0 : i32
    return %c0_i32, %c0_i32_0 : i32, i32
  }
  func.func @transform_1(%arg0: i32) -> (i32, i32) {
    %c0_i32 = arith.constant 0 : i32
    %c0_i32_0 = arith.constant 0 : i32
    return %c0_i32, %arg0 : i32, i32
  }
  func.func @transform_2(%arg0: i32) -> (i32, i32) {
    %c0_i32 = arith.constant 0 : i32
    %c0_i32_0 = arith.constant 0 : i32
    return %c0_i32, %arg0 : i32, i32
  }
  func.func @transform_3(%arg0: i32) -> (i32, i32) {
    %c0_i32 = arith.constant 0 : i32
    %c0_i32_0 = arith.constant 0 : i32
    %c0_i32_1 = arith.constant 0 : i32
    return %c0_i32, %c0_i32_0 : i32, i32
  }
  func.func @transform_4(%arg0: i32) -> (i32, i32) {
    %c0_i32 = arith.constant 0 : i32
    %c0_i32_0 = arith.constant 0 : i32
    return %c0_i32, %arg0 : i32, i32
  }
  func.func @transform_5(%arg0: i32) -> (i32, i32) {
    %c0_i32 = arith.constant 0 : i32
    %c0_i32_0 = arith.constant 0 : i32
    return %c0_i32, %arg0 : i32, i32
  }
  func.func @transform_6(%arg0: i32) -> (i32, i32) {
    %c0_i32 = arith.constant 0 : i32
    %c0_i32_0 = arith.constant 0 : i32
    %c0_i32_1 = arith.constant 0 : i32
    return %c0_i32, %c0_i32_0 : i32, i32
  }
  func.func @transform_7(%arg0: i32) -> (i32, i32) {
    %c0_i32 = arith.constant 0 : i32
    %c0_i32_0 = arith.constant 0 : i32
    %c0_i32_1 = arith.constant 0 : i32
    return %c0_i32, %c0_i32_0 : i32, i32
  }
  func.func @transform_8(%arg0: i32) -> (i32, i32) {
    %c0_i32 = arith.constant 0 : i32
    %c0_i32_0 = arith.constant 0 : i32
    %c0_i32_1 = arith.constant 0 : i32
    return %c0_i32, %c0_i32_0 : i32, i32
  }
}

</mosaic_0001>

<bundles_post_ra>
// kernel: lid_detector_forward.1
= control target key start
LH: loop header
LB: loop body
LE: loop exit
PB: predicated region body
PF: predicated region fallthrough
CT: control target
= control target key end

     0   :  { %s1865_s29 = smov 0   ;;  %s2377_s0 = inlined_call_operand.vmem [shape: bf16[8,4], index: 0, kind: input, shape index: {}]   ;;  %s2378_s1 = inlined_call_operand.vmem [shape: bf16[4,256], index: 1, kind: input, shape index: {}]   ;;  %s2379_s2 = inlined_call_operand.vmem [shape: f32[1,256], index: 2, kind: input, shape index: {}]   ;;  %s2380_s3 = inlined_call_operand.vmem [shape: bf16[8,8], index: 3, kind: input, shape index: {}]   ;;  %s2381_s4 = inlined_call_operand.vmem [shape: bf16[8,256], index: 4, kind: input, shape index: {}]   ;;  %s2382_s5 = inlined_call_operand.vmem [shape: f32[1,256], index: 5, kind: input, shape index: {}]   ;;  %s2383_s6 = inlined_call_operand.vmem [shape: f32[16,1], index: 6, kind: input, shape index: {}]   ;;  %s2384_s7 = inlined_call_operand.<no memory space> [shape: f32[1,1], index: 7, kind: input, shape index: {}]   ;;  %s2385_s8 = inlined_call_operand.vmem [shape: f32[8,1], index: 8, kind: output, shape index: {}]  }
   0x1   :  { %v13_v0 = vstv %s2384_s7 }
   0x2   :  { %14 = vst [vmem:[#allocation3] sm:$0x1] %v13_v0 }
   0x3 LB: > { %s1871_s30 = sadd.s32 4294967295, %s1812_s29   ;;  %p1751_p0 = scmp.ge.s32.totalorder %s1812_s29, 1  ;;  %s1812_s29 = sphi %s1865_s29, %s20_s29  }
   0x4   : > { %p283_p1 = scmp.lt.s32.totalorder %s1812_s29, 3 }
   0x6   : > { %p284_p2 = pnand %p1751_p0, %p283_p1 }
   0x8   : > { %287 = sbr.rel (%p284_p2) target bundleno = 9487 (0x250f), region = 52 }
   0xf   : > { %p321_p3 = scmp.lt.s32.totalorder %s1871_s30, 1  ;;  %p1754_p4 = scmp.ne.s32.totalorder %s1871_s30, 0 }
  0x10   : > { %v1814_v1 = vmov (!%p1754_p4), inf  }
  0x11   : > { %s1877_s7 = scalar_select %p321_p3, %s1871_s30, 1 }
  0x12   : > { %339 = sbr.rel (%p1754_p4) target bundleno = 25 (0x19), region = 56  ;;  %340 = vst [vmem:[#allocation2] sm:$0xff] (!%p1754_p4), %v1814_v1  ;;  %341 = vst [vmem:[#allocation2 + $0x10] sm:$0xff] (!%p1754_p4), %v1814_v1 }
  0x13   : > { %s1752_s9 = sshll.u32 %s1877_s7, 1  ;;  %s327_s12 = scalar_lea.vmem %s2379_s2, %s1877_s7 }
  0x14   : > { %s324_s15 = scalar_lea.vmem %s2378_s1, %s1752_s9  ;;  %s1753_s16 = sshll.u32 %s1877_s7, 2 }
  0x15   : > { %s331_s19 = scalar_lea.vmem %s2381_s4, %s1753_s16  ;;  %s334_s22 = scalar_lea.vmem %s2382_s5, %s1877_s7 }
  0x19 PF: > { %v343_v2 = vld [vmem:[%s324_s15] sm:$0x3]  ;;  %vm354_vm0 = vcmask 1041408   ;;  %v1815_v4 = vmov 0.0   ;;  %vm421_vm1 = vcmask 1043456   ;;  %vm1816_vm2 = vmmov 0  }
  0x1a   : > { %v410_v3 = vld [vmem:[%s331_s19] sm:$0xf]  ;;  %1767 = vmatprep.subr.bf16.mxu0 %v1815_v4  ;;  %v356_v5 = vsel %vm354_vm0, %v343_v2, 0  ;;  %1773 = vmatprep.subr.bf16.mxu1 %v1815_v4  ;;  %vm347_vm3 = vcmask 31744   ;;  %vm414_vm4 = vcmask 64512   ;;  %v478_v36 = vld [vmem:[#allocation2 + $0x10] sm:$0xff]  ;;  %v480_v39 = vlaneseq }
  0x1b   : > { %v342_v6 = vld [vmem:[%s2377_s0] sm:$0xf]  ;;  %1768 = vmatpush3.bf16.msra.mxu0 %v356_v5  ;;  %v423_v7 = vsel %vm421_vm1, %v410_v3, 0  ;;  %1769 = vmatprep.mubr.msk.bf16.mxu0 %vm1816_vm2, %v1815_v4  ;;  %p1759_p5 = scmp.ne.s32.totalorder %s1871_s30, 1 }
  0x1c   : > { %v409_v8 = vld [vmem:[%s2380_s3] sm:$0xf]  ;;  %v345_v9 = vunpack.c.l.bf16 %v342_v6  ;;  %1774 = vmatpush3.bf16.msra.mxu1 %v423_v7  ;;  %1775 = vmatprep.mubr.msk.bf16.mxu1 %vm1816_vm2, %v1815_v4  ;;  %v1912_v40 = vand.u32 127, %v480_v39 }
  0x1d   : > { %v412_v10 = vunpack.c.l.bf16 %v409_v8  ;;  %v1756_v16 = vld [vmem:[%s327_s12] ss:$0 sm:$0xff] }
  0x1e   : > { %v346_v11 = vmul.f32 %v345_v9, %v345_v9  ;;  %1770 = vmatmul.mubr.msk.bf16.vlgmr.msra.gmra.mrb[0].mxu0 %vm347_vm3, %v342_v6  ;;  %v1758_v17 = vld [vmem:[%s334_s22] ss:$0 sm:$0xff]  ;;  %v1915_v41 = vadd.s32 128, %v1912_v40 }
  0x1f   : > { %v413_v12 = vmul.f32 %v412_v10, %v412_v10  ;;  %1776 = vmatmul.mubr.msk.bf16.vlgmr.msra.gmra.mrb[0].mxu1 %vm414_vm4, %v409_v8  ;;  %v476_v33 = vld [vmem:[#allocation2] sm:$0xff] }
  0x20   : > { %v348_v13 = vsel %vm347_vm3, %v346_v11, 0.0 }
  0x21   : > { %349 = vadd.xlane.f32.xlu0 %v348_v13  ;;  %v415_v14 = vsel %vm414_vm4, %v413_v12, 0.0 }
  0x25   : > { %416 = vadd.xlane.f32.xlu0 %v415_v14 }
  0xae   : > { %v350_v15 = vpop.xlane.xlu0 %349 }
  0xaf   : > { %v404_v19 = vadd.f32 %v1756_v16, %v350_v15 }
  0xb2   : > { %v417_v18 = vpop.xlane.xlu0 %416 }
  0xb3   : > { %v471_v21 = vadd.f32 %v1758_v17, %v417_v18 }
  0xf1   : > { %v392_v20 = vpop.f32.mrb[0].mxu0 }
  0xf2   : > { %v405_v22 = vmul.f32 2.0, %v392_v20  ;;  %v1771_v23 = vpop.f32.mrb[1].mxu0  ;;  %v459_v24 = vpop.f32.mrb[0].mxu1 }
  0xf3   : > { %v472_v25 = vmul.f32 2.0, %v459_v24  ;;  %v395_v26 = vpop.f32.mrb[2].mxu0  ;;  %v1777_v27 = vpop.f32.mrb[1].mxu1 }
  0xf4   : > { %v406_v28 = vsub.f32 %v404_v19, %v405_v22  ;;  %v1772_v29 = vpop.f32.mrb[3].mxu0  ;;  %v462_v30 = vpop.f32.mrb[2].mxu1 }
  0xf5   : > { %v1778_v31 = vpop.f32.mrb[3].mxu1  ;;  %v473_v32 = vsub.f32 %v471_v21, %v472_v25 }
  0xf6   : > { %v407_v34 = vmax.f32 %v406_v28, 1e-12 }
  0xf7   : > { %v474_v35 = vmax.f32 %v473_v32, 1e-12 }
  0xf8   : > { %v483_v37 = vmin.f32 %v476_v33, %v407_v34 }
  0xf9   : > { %v486_v38 = vmin.f32 %v478_v36, %v474_v35 }
  0xfa   : > { %484 = vmin.xlane.f32.xlu1 %v483_v37 }
  0xfe   : > { %487 = vmin.xlane.f32.xlu1 %v486_v38 }
 0x187   : > { %v1917_v42 = vpop.xlane.xlu1 %484 }
 0x188   : > { %vm489_vm5 = vcmp.eq.f32.partialorder %v476_v33, %v1917_v42  ;;  %vm490_vm6 = vcmp.eq.f32.partialorder %v407_v34, %v1917_v42 }
 0x189   : > { %v493_v43 = vsel %vm489_vm5, %v1912_v40, 256  ;;  %v494_v44 = vsel %vm490_vm6, %v1915_v41, 256 }
 0x18a   : > { %vm497_vm7 = vcmp.lt.s32.totalorder %v493_v43, %v494_v44 }
 0x18b   : > { %v1923_v45 = vpop.xlane.xlu1 %487  ;;  %v498_v46 = vsel %vm497_vm7, %v493_v43, %v494_v44 }
 0x18c   : > { %vm491_vm8 = vcmp.eq.f32.partialorder %v478_v36, %v1923_v45  ;;  %vm492_vm9 = vcmp.eq.f32.partialorder %v474_v35, %v1923_v45  ;;  %v500_v47 = vshra.s32 %v498_v46, 16  ;;  %v499_v54 = vand.u32 65535, %v498_v46 }
 0x18d   : > { %v495_v48 = vsel %vm491_vm8, %v1912_v40, 256  ;;  %v496_v49 = vsel %vm492_vm9, %v1915_v41, 256 }
 0x18e   : > { %v502_v50 = vcvt.s32.f32 %v500_v47  ;;  %vm513_vm10 = vcmp.lt.s32.totalorder %v495_v48, %v496_v49  ;;  %v501_v56 = vcvt.s32.f32 %v499_v54 }
 0x18f   : > { %v514_v51 = vsel %vm513_vm10, %v495_v48, %v496_v49 }
 0x190   : > { %503 = vmin.xlane.f32.xlu0 %v502_v50  ;;  %v516_v52 = vshra.s32 %v514_v51, 16  ;;  %v515_v57 = vand.u32 65535, %v514_v51 }
 0x192   : > { %v518_v53 = vcvt.s32.f32 %v516_v52  ;;  %v517_v60 = vcvt.s32.f32 %v515_v57 }
 0x194   : > { %519 = vmin.xlane.f32.xlu1 %v518_v53 }
 0x21d   : > { %v504_v55 = vpop.xlane.xlu0 %503 }
 0x21e   : > { %vm505_vm11 = vcmp.eq.f32.partialorder %v502_v50, %v504_v55  ;;  %v510_v62 = vcvt.f32.s32 %v504_v55 }
 0x21f   : > { %v506_v58 = vsel %vm505_vm11, %v501_v56, inf }
 0x220   : > { %507 = vmin.xlane.f32.xlu0 %v506_v58  ;;  %v511_v0 = vshll.u32 %v510_v62, 16 }
 0x221   : > { %v520_v59 = vpop.xlane.xlu1 %519 }
 0x222   : > { %vm521_vm12 = vcmp.eq.f32.partialorder %v518_v53, %v520_v59  ;;  %v526_v1 = vcvt.f32.s32 %v520_v59 }
 0x223   : > { %v522_v61 = vsel %vm521_vm12, %v517_v60, inf }
 0x224   : > { %523 = vmin.xlane.f32.xlu1 %v522_v61  ;;  %v527_v5 = vshll.u32 %v526_v1, 16 }
 0x2ad   : > { %v508_v63 = vpop.xlane.xlu0 %507 }
 0x2ae   : > { %v509_v2 = vcvt.f32.s32 %v508_v63 }
 0x2b0   : > { %v512_v3 = vadd.s32 %v511_v0, %v509_v2 }
 0x2b1   : > { %v524_v4 = vpop.xlane.xlu1 %523 }
 0x2b2   : > { %v525_v6 = vcvt.f32.s32 %v524_v4  ;;  %vm529_vm13 = vcmp.eq.s32.totalorder %v1912_v40, %v512_v3  ;;  %vm530_vm14 = vcmp.eq.s32.totalorder %v1915_v41, %v512_v3 }
 0x2b3   : > { %v533_v7 = vsel %vm529_vm13, inf, %v476_v33  ;;  %v534_v8 = vsel %vm530_vm14, inf, %v407_v34 }
 0x2b4   : > { %v528_v9 = vadd.s32 %v527_v5, %v525_v6  ;;  %v540_v10 = vmin.f32 %v533_v7, %v534_v8 }
 0x2b6   : > { %541 = vmin.xlane.f32.xlu0 %v540_v10  ;;  %vm531_vm15 = vcmp.eq.s32.totalorder %v1912_v40, %v528_v9  ;;  %vm532_vm0 = vcmp.eq.s32.totalorder %v1915_v41, %v528_v9 }
 0x2b7   : > { %v535_v11 = vsel %vm531_vm15, inf, %v478_v36  ;;  %v536_v12 = vsel %vm532_vm0, inf, %v474_v35 }
 0x2b8   : > { %v543_v13 = vmin.f32 %v535_v11, %v536_v12 }
 0x2ba   : > { %544 = vmin.xlane.f32.xlu1 %v543_v13 }
 0x343   : > { %v1933_v14 = vpop.xlane.xlu0 %541 }
 0x344   : > { %vm546_vm1 = vcmp.eq.f32.partialorder %v533_v7, %v1933_v14  ;;  %vm547_vm2 = vcmp.eq.f32.partialorder %v534_v8, %v1933_v14 }
 0x345   : > { %v550_v15 = vsel %vm546_vm1, %v1912_v40, 256  ;;  %v551_v16 = vsel %vm547_vm2, %v1915_v41, 256 }
 0x346   : > { %vm554_vm3 = vcmp.lt.s32.totalorder %v550_v15, %v551_v16 }
 0x347   : > { %v1939_v17 = vpop.xlane.xlu1 %544  ;;  %v555_v18 = vsel %vm554_vm3, %v550_v15, %v551_v16 }
 0x348   : > { %vm548_vm4 = vcmp.eq.f32.partialorder %v535_v11, %v1939_v17  ;;  %vm549_vm5 = vcmp.eq.f32.partialorder %v536_v12, %v1939_v17  ;;  %v557_v19 = vshra.s32 %v555_v18, 16  ;;  %v556_v26 = vand.u32 65535, %v555_v18 }
 0x349   : > { %v552_v20 = vsel %vm548_vm4, %v1912_v40, 256  ;;  %v553_v21 = vsel %vm549_vm5, %v1915_v41, 256 }
 0x34a   : > { %v559_v22 = vcvt.s32.f32 %v557_v19  ;;  %vm570_vm6 = vcmp.lt.s32.totalorder %v552_v20, %v553_v21  ;;  %v558_v28 = vcvt.s32.f32 %v556_v26 }
 0x34b   : > { %v571_v23 = vsel %vm570_vm6, %v552_v20, %v553_v21 }
 0x34c   : > { %560 = vmin.xlane.f32.xlu0 %v559_v22  ;;  %v573_v24 = vshra.s32 %v571_v23, 16  ;;  %v572_v29 = vand.u32 65535, %v571_v23 }
 0x34e   : > { %v575_v25 = vcvt.s32.f32 %v573_v24  ;;  %v574_v32 = vcvt.s32.f32 %v572_v29 }
 0x350   : > { %576 = vmin.xlane.f32.xlu1 %v575_v25 }
 0x3d9   : > { %v561_v27 = vpop.xlane.xlu0 %560 }
 0x3da   : > { %vm562_vm7 = vcmp.eq.f32.partialorder %v559_v22, %v561_v27  ;;  %v567_v34 = vcvt.f32.s32 %v561_v27 }
 0x3db   : > { %v563_v30 = vsel %vm562_vm7, %v558_v28, inf }
 0x3dc   : > { %564 = vmin.xlane.f32.xlu0 %v563_v30  ;;  %v568_v36 = vshll.u32 %v567_v34, 16 }
 0x3dd   : > { %v577_v31 = vpop.xlane.xlu1 %576 }
 0x3de   : > { %vm578_vm8 = vcmp.eq.f32.partialorder %v575_v25, %v577_v31  ;;  %v583_v37 = vcvt.f32.s32 %v577_v31 }
 0x3df   : > { %v579_v33 = vsel %vm578_vm8, %v574_v32, inf }
 0x3e0   : > { %580 = vmin.xlane.f32.xlu1 %v579_v33  ;;  %v584_v44 = vshll.u32 %v583_v37, 16 }
 0x469   : > { %v565_v35 = vpop.xlane.xlu0 %564 }
 0x46a   : > { %v566_v38 = vcvt.f32.s32 %v565_v35 }
 0x46c   : > { %v569_v39 = vadd.s32 %v568_v36, %v566_v38 }
 0x46d   : > { %v581_v43 = vpop.xlane.xlu1 %580 }
 0x46e   : > { %v582_v46 = vcvt.f32.s32 %v581_v43  ;;  %vm586_vm9 = vcmp.eq.s32.totalorder %v1912_v40, %v569_v39  ;;  %vm587_vm10 = vcmp.eq.s32.totalorder %v1915_v41, %v569_v39 }
 0x46f   : > { %v590_v47 = vsel %vm586_vm9, inf, %v533_v7  ;;  %v591_v48 = vsel %vm587_vm10, inf, %v534_v8 }
 0x470   : > { %v585_v49 = vadd.s32 %v584_v44, %v582_v46  ;;  %v597_v50 = vmin.f32 %v590_v47, %v591_v48 }
 0x472   : > { %598 = vmin.xlane.f32.xlu0 %v597_v50  ;;  %vm588_vm11 = vcmp.eq.s32.totalorder %v1912_v40, %v585_v49  ;;  %vm589_vm12 = vcmp.eq.s32.totalorder %v1915_v41, %v585_v49 }
 0x473   : > { %v592_v51 = vsel %vm588_vm11, inf, %v535_v11  ;;  %v593_v52 = vsel %vm589_vm12, inf, %v536_v12 }
 0x474   : > { %v600_v53 = vmin.f32 %v592_v51, %v593_v52 }
 0x476   : > { %601 = vmin.xlane.f32.xlu1 %v600_v53 }
 0x4ff   : > { %v1949_v54 = vpop.xlane.xlu0 %598 }
 0x500   : > { %vm603_vm13 = vcmp.eq.f32.partialorder %v590_v47, %v1949_v54  ;;  %vm604_vm14 = vcmp.eq.f32.partialorder %v591_v48, %v1949_v54 }
 0x501   : > { %v607_v55 = vsel %vm603_vm13, %v1912_v40, 256  ;;  %v608_v56 = vsel %vm604_vm14, %v1915_v41, 256 }
 0x502   : > { %vm611_vm15 = vcmp.lt.s32.totalorder %v607_v55, %v608_v56 }
 0x503   : > { %v1955_v57 = vpop.xlane.xlu1 %601  ;;  %v612_v58 = vsel %vm611_vm15, %v607_v55, %v608_v56 }
 0x504   : > { %vm605_vm0 = vcmp.eq.f32.partialorder %v592_v51, %v1955_v57  ;;  %vm606_vm1 = vcmp.eq.f32.partialorder %v593_v52, %v1955_v57  ;;  %v614_v59 = vshra.s32 %v612_v58, 16  ;;  %v613_v2 = vand.u32 65535, %v612_v58 }
 0x505   : > { %v609_v60 = vsel %vm605_vm0, %v1912_v40, 256  ;;  %v610_v61 = vsel %vm606_vm1, %v1915_v41, 256 }
 0x506   : > { %v616_v62 = vcvt.s32.f32 %v614_v59  ;;  %vm627_vm2 = vcmp.lt.s32.totalorder %v609_v60, %v610_v61  ;;  %v615_v4 = vcvt.s32.f32 %v613_v2 }
 0x507   : > { %v628_v63 = vsel %vm627_vm2, %v609_v60, %v610_v61 }
 0x508   : > { %617 = vmin.xlane.f32.xlu0 %v616_v62  ;;  %v630_v0 = vshra.s32 %v628_v63, 16  ;;  %v629_v5 = vand.u32 65535, %v628_v63 }
 0x50a   : > { %v632_v1 = vcvt.s32.f32 %v630_v0  ;;  %v631_v8 = vcvt.s32.f32 %v629_v5 }
 0x50c   : > { %633 = vmin.xlane.f32.xlu1 %v632_v1 }
 0x595   : > { %v618_v3 = vpop.xlane.xlu0 %617 }
 0x596   : > { %vm619_vm3 = vcmp.eq.f32.partialorder %v616_v62, %v618_v3  ;;  %v624_v10 = vcvt.f32.s32 %v618_v3 }
 0x597   : > { %v620_v6 = vsel %vm619_vm3, %v615_v4, inf }
 0x598   : > { %621 = vmin.xlane.f32.xlu0 %v620_v6  ;;  %v625_v12 = vshll.u32 %v624_v10, 16 }
 0x599   : > { %v634_v7 = vpop.xlane.xlu1 %633 }
 0x59a   : > { %vm635_vm4 = vcmp.eq.f32.partialorder %v632_v1, %v634_v7  ;;  %v640_v13 = vcvt.f32.s32 %v634_v7 }
 0x59b   : > { %v636_v9 = vsel %vm635_vm4, %v631_v8, inf }
 0x59c   : > { %637 = vmin.xlane.f32.xlu1 %v636_v9  ;;  %v641_v19 = vshll.u32 %v640_v13, 16 }
 0x625   : > { %v622_v11 = vpop.xlane.xlu0 %621 }
 0x626   : > { %v623_v15 = vcvt.f32.s32 %v622_v11 }
 0x628   : > { %v626_v16 = vadd.s32 %v625_v12, %v623_v15 }
 0x629   : > { %v638_v18 = vpop.xlane.xlu1 %637 }
 0x62a   : > { %v639_v20 = vcvt.f32.s32 %v638_v18  ;;  %vm643_vm5 = vcmp.eq.s32.totalorder %v1912_v40, %v626_v16  ;;  %vm644_vm6 = vcmp.eq.s32.totalorder %v1915_v41, %v626_v16 }
 0x62b   : > { %v647_v21 = vsel %vm643_vm5, inf, %v590_v47  ;;  %v648_v22 = vsel %vm644_vm6, inf, %v591_v48 }
 0x62c   : > { %v642_v23 = vadd.s32 %v641_v19, %v639_v20  ;;  %v654_v24 = vmin.f32 %v647_v21, %v648_v22 }
 0x62e   : > { %655 = vmin.xlane.f32.xlu0 %v654_v24  ;;  %vm645_vm7 = vcmp.eq.s32.totalorder %v1912_v40, %v642_v23  ;;  %vm646_vm8 = vcmp.eq.s32.totalorder %v1915_v41, %v642_v23 }
 0x62f   : > { %v649_v25 = vsel %vm645_vm7, inf, %v592_v51  ;;  %v650_v26 = vsel %vm646_vm8, inf, %v593_v52 }
 0x630   : > { %v657_v27 = vmin.f32 %v649_v25, %v650_v26 }
 0x632   : > { %658 = vmin.xlane.f32.xlu1 %v657_v27 }
 0x6bb   : > { %v1965_v28 = vpop.xlane.xlu0 %655 }
 0x6bc   : > { %vm660_vm9 = vcmp.eq.f32.partialorder %v647_v21, %v1965_v28  ;;  %vm661_vm10 = vcmp.eq.f32.partialorder %v648_v22, %v1965_v28 }
 0x6bd   : > { %v664_v29 = vsel %vm660_vm9, %v1912_v40, 256  ;;  %v665_v30 = vsel %vm661_vm10, %v1915_v41, 256 }
 0x6be   : > { %vm668_vm11 = vcmp.lt.s32.totalorder %v664_v29, %v665_v30 }
 0x6bf   : > { %v1971_v31 = vpop.xlane.xlu1 %658  ;;  %v669_v32 = vsel %vm668_vm11, %v664_v29, %v665_v30 }
 0x6c0   : > { %vm662_vm12 = vcmp.eq.f32.partialorder %v649_v25, %v1971_v31  ;;  %vm663_vm13 = vcmp.eq.f32.partialorder %v650_v26, %v1971_v31  ;;  %v671_v33 = vshra.s32 %v669_v32, 16  ;;  %v670_v43 = vand.u32 65535, %v669_v32 }
 0x6c1   : > { %v666_v34 = vsel %vm662_vm12, %v1912_v40, 256  ;;  %v667_v35 = vsel %vm663_vm13, %v1915_v41, 256 }
 0x6c2   : > { %v673_v36 = vcvt.s32.f32 %v671_v33  ;;  %vm684_vm14 = vcmp.lt.s32.totalorder %v666_v34, %v667_v35  ;;  %v672_v46 = vcvt.s32.f32 %v670_v43 }
 0x6c3   : > { %v685_v37 = vsel %vm684_vm14, %v666_v34, %v667_v35 }
 0x6c4   : > { %674 = vmin.xlane.f32.xlu0 %v673_v36  ;;  %v687_v38 = vshra.s32 %v685_v37, 16  ;;  %v686_v47 = vand.u32 65535, %v685_v37 }
 0x6c6   : > { %v689_v39 = vcvt.s32.f32 %v687_v38  ;;  %v688_v50 = vcvt.s32.f32 %v686_v47 }
 0x6c8   : > { %690 = vmin.xlane.f32.xlu1 %v689_v39 }
 0x751   : > { %v675_v44 = vpop.xlane.xlu0 %674 }
 0x752   : > { %vm676_vm15 = vcmp.eq.f32.partialorder %v673_v36, %v675_v44  ;;  %v681_v52 = vcvt.f32.s32 %v675_v44 }
 0x753   : > { %v677_v48 = vsel %vm676_vm15, %v672_v46, inf }
 0x754   : > { %678 = vmin.xlane.f32.xlu0 %v677_v48  ;;  %v682_v55 = vshll.u32 %v681_v52, 16 }
 0x755   : > { %v691_v49 = vpop.xlane.xlu1 %690 }
 0x756   : > { %vm692_vm0 = vcmp.eq.f32.partialorder %v689_v39, %v691_v49  ;;  %v697_v56 = vcvt.f32.s32 %v691_v49 }
 0x757   : > { %v693_v51 = vsel %vm692_vm0, %v688_v50, inf }
 0x758   : > { %694 = vmin.xlane.f32.xlu1 %v693_v51  ;;  %v698_v61 = vshll.u32 %v697_v56, 16 }
 0x7e1   : > { %v679_v53 = vpop.xlane.xlu0 %678 }
 0x7e2   : > { %v680_v58 = vcvt.f32.s32 %v679_v53 }
 0x7e4   : > { %v683_v59 = vadd.s32 %v682_v55, %v680_v58 }
 0x7e5   : > { %v695_v60 = vpop.xlane.xlu1 %694 }
 0x7e6   : > { %v696_v62 = vcvt.f32.s32 %v695_v60  ;;  %vm700_vm1 = vcmp.eq.s32.totalorder %v1912_v40, %v683_v59  ;;  %vm701_vm2 = vcmp.eq.s32.totalorder %v1915_v41, %v683_v59 }
 0x7e7   : > { %v704_v63 = vsel %vm700_vm1, inf, %v647_v21  ;;  %v705_v0 = vsel %vm701_vm2, inf, %v648_v22 }
 0x7e8   : > { %v699_v1 = vadd.s32 %v698_v61, %v696_v62  ;;  %v711_v2 = vmin.f32 %v704_v63, %v705_v0 }
 0x7ea   : > { %712 = vmin.xlane.f32.xlu0 %v711_v2  ;;  %vm702_vm3 = vcmp.eq.s32.totalorder %v1912_v40, %v699_v1  ;;  %vm703_vm4 = vcmp.eq.s32.totalorder %v1915_v41, %v699_v1 }
 0x7eb   : > { %v706_v3 = vsel %vm702_vm3, inf, %v649_v25  ;;  %v707_v4 = vsel %vm703_vm4, inf, %v650_v26 }
 0x7ec   : > { %v714_v5 = vmin.f32 %v706_v3, %v707_v4 }
 0x7ee   : > { %715 = vmin.xlane.f32.xlu1 %v714_v5 }
 0x877   : > { %v1981_v6 = vpop.xlane.xlu0 %712 }
 0x878   : > { %vm717_vm5 = vcmp.eq.f32.partialorder %v704_v63, %v1981_v6  ;;  %vm718_vm6 = vcmp.eq.f32.partialorder %v705_v0, %v1981_v6 }
 0x879   : > { %v721_v7 = vsel %vm717_vm5, %v1912_v40, 256  ;;  %v722_v8 = vsel %vm718_vm6, %v1915_v41, 256 }
 0x87a   : > { %vm725_vm7 = vcmp.lt.s32.totalorder %v721_v7, %v722_v8 }
 0x87b   : > { %v1987_v9 = vpop.xlane.xlu1 %715  ;;  %v726_v10 = vsel %vm725_vm7, %v721_v7, %v722_v8 }
 0x87c   : > { %vm719_vm8 = vcmp.eq.f32.partialorder %v706_v3, %v1987_v9  ;;  %vm720_vm9 = vcmp.eq.f32.partialorder %v707_v4, %v1987_v9  ;;  %v728_v11 = vshra.s32 %v726_v10, 16  ;;  %v727_v20 = vand.u32 65535, %v726_v10 }
 0x87d   : > { %v723_v12 = vsel %vm719_vm8, %v1912_v40, 256  ;;  %v724_v13 = vsel %vm720_vm9, %v1915_v41, 256 }
 0x87e   : > { %v730_v15 = vcvt.s32.f32 %v728_v11  ;;  %vm741_vm10 = vcmp.lt.s32.totalorder %v723_v12, %v724_v13  ;;  %v729_v22 = vcvt.s32.f32 %v727_v20 }
 0x87f   : > { %v742_v16 = vsel %vm741_vm10, %v723_v12, %v724_v13 }
 0x880   : > { %731 = vmin.xlane.f32.xlu0 %v730_v15  ;;  %v744_v18 = vshra.s32 %v742_v16, 16  ;;  %v743_v23 = vand.u32 65535, %v742_v16 }
 0x882   : > { %v746_v19 = vcvt.s32.f32 %v744_v18  ;;  %v745_v26 = vcvt.s32.f32 %v743_v23 }
 0x884   : > { %747 = vmin.xlane.f32.xlu1 %v746_v19 }
 0x90d   : > { %v732_v21 = vpop.xlane.xlu0 %731 }
 0x90e   : > { %vm733_vm11 = vcmp.eq.f32.partialorder %v730_v15, %v732_v21  ;;  %v738_v29 = vcvt.f32.s32 %v732_v21 }
 0x90f   : > { %v734_v24 = vsel %vm733_vm11, %v729_v22, inf }
 0x910   : > { %735 = vmin.xlane.f32.xlu0 %v734_v24  ;;  %v739_v32 = vshll.u32 %v738_v29, 16 }
 0x911   : > { %v748_v25 = vpop.xlane.xlu1 %747 }
 0x912   : > { %vm749_vm12 = vcmp.eq.f32.partialorder %v746_v19, %v748_v25  ;;  %v754_v33 = vcvt.f32.s32 %v748_v25 }
 0x913   : > { %v750_v27 = vsel %vm749_vm12, %v745_v26, inf }
 0x914   : > { %751 = vmin.xlane.f32.xlu1 %v750_v27  ;;  %v755_v37 = vshll.u32 %v754_v33, 16 }
 0x99d   : > { %v736_v30 = vpop.xlane.xlu0 %735 }
 0x99e   : > { %v737_v34 = vcvt.f32.s32 %v736_v30 }
 0x9a0   : > { %v740_v35 = vadd.s32 %v739_v32, %v737_v34 }
 0x9a1   : > { %v752_v36 = vpop.xlane.xlu1 %751 }
 0x9a2   : > { %vm757_vm13 = vcmp.eq.s32.totalorder %v1912_v40, %v740_v35  ;;  %vm758_vm14 = vcmp.eq.s32.totalorder %v1915_v41, %v740_v35  ;;  %v753_v38 = vcvt.f32.s32 %v752_v36 }
 0x9a3   : > { %v761_v39 = vsel %vm757_vm13, inf, %v704_v63  ;;  %v762_v43 = vsel %vm758_vm14, inf, %v705_v0 }
 0x9a4   : > { %v756_v44 = vadd.s32 %v755_v37, %v753_v38  ;;  %v768_v46 = vmin.f32 %v761_v39, %v762_v43 }
 0x9a6   : > { %vm759_vm15 = vcmp.eq.s32.totalorder %v1912_v40, %v756_v44  ;;  %vm760_vm0 = vcmp.eq.s32.totalorder %v1915_v41, %v756_v44  ;;  %769 = vmin.xlane.f32.xlu0 %v768_v46 }
 0x9a7   : > { %v763_v47 = vsel %vm759_vm15, inf, %v706_v3  ;;  %v764_v48 = vsel %vm760_vm0, inf, %v707_v4 }
 0x9a8   : > { %v771_v49 = vmin.f32 %v763_v47, %v764_v48 }
 0x9aa   : > { %772 = vmin.xlane.f32.xlu1 %v771_v49 }
 0xa33   : > { %v1997_v50 = vpop.xlane.xlu0 %769 }
 0xa34   : > { %vm774_vm1 = vcmp.eq.f32.partialorder %v761_v39, %v1997_v50  ;;  %vm775_vm2 = vcmp.eq.f32.partialorder %v762_v43, %v1997_v50 }
 0xa35   : > { %v778_v51 = vsel %vm774_vm1, %v1912_v40, 256  ;;  %v779_v52 = vsel %vm775_vm2, %v1915_v41, 256 }
 0xa36   : > { %vm782_vm3 = vcmp.lt.s32.totalorder %v778_v51, %v779_v52 }
 0xa37   : > { %v2003_v53 = vpop.xlane.xlu1 %772  ;;  %v783_v55 = vsel %vm782_vm3, %v778_v51, %v779_v52 }
 0xa38   : > { %vm776_vm4 = vcmp.eq.f32.partialorder %v763_v47, %v2003_v53  ;;  %vm777_vm5 = vcmp.eq.f32.partialorder %v764_v48, %v2003_v53  ;;  %v785_v56 = vshra.s32 %v783_v55, 16  ;;  %v784_v0 = vand.u32 65535, %v783_v55 }
 0xa39   : > { %v780_v58 = vsel %vm776_vm4, %v1912_v40, 256  ;;  %v781_v59 = vsel %vm777_vm5, %v1915_v41, 256 }
 0xa3a   : > { %v787_v60 = vcvt.s32.f32 %v785_v56  ;;  %vm798_vm6 = vcmp.lt.s32.totalorder %v780_v58, %v781_v59  ;;  %v786_v2 = vcvt.s32.f32 %v784_v0 }
 0xa3b   : > { %v799_v61 = vsel %vm798_vm6, %v780_v58, %v781_v59 }
 0xa3c   : > { %788 = vmin.xlane.f32.xlu0 %v787_v60  ;;  %v801_v62 = vshra.s32 %v799_v61, 16  ;;  %v800_v3 = vand.u32 65535, %v799_v61 }
 0xa3e   : > { %v803_v63 = vcvt.s32.f32 %v801_v62  ;;  %v802_v7 = vcvt.s32.f32 %v800_v3 }
 0xa40   : > { %804 = vmin.xlane.f32.xlu1 %v803_v63 }
 0xac9   : > { %v789_v1 = vpop.xlane.xlu0 %788 }
 0xaca   : > { %vm790_vm7 = vcmp.eq.f32.partialorder %v787_v60, %v789_v1  ;;  %v795_v10 = vcvt.f32.s32 %v789_v1 }
 0xacb   : > { %v791_v4 = vsel %vm790_vm7, %v786_v2, inf }
 0xacc   : > { %792 = vmin.xlane.f32.xlu0 %v791_v4  ;;  %v796_v12 = vshll.u32 %v795_v10, 16 }
 0xacd   : > { %v805_v5 = vpop.xlane.xlu1 %804 }
 0xace   : > { %vm806_vm8 = vcmp.eq.f32.partialorder %v803_v63, %v805_v5  ;;  %v811_v13 = vcvt.f32.s32 %v805_v5 }
 0xacf   : > { %v807_v8 = vsel %vm806_vm8, %v802_v7, inf }
 0xad0   : > { %808 = vmin.xlane.f32.xlu1 %v807_v8  ;;  %v812_v19 = vshll.u32 %v811_v13, 16 }
 0xb59   : > { %v793_v11 = vpop.xlane.xlu0 %792 }
 0xb5a   : > { %v794_v15 = vcvt.f32.s32 %v793_v11 }
 0xb5c   : > { %v797_v16 = vadd.s32 %v796_v12, %v794_v15 }
 0xb5d   : > { %v809_v18 = vpop.xlane.xlu1 %808 }
 0xb5e   : > { %vm814_vm9 = vcmp.eq.s32.totalorder %v1912_v40, %v797_v16  ;;  %vm815_vm10 = vcmp.eq.s32.totalorder %v1915_v41, %v797_v16  ;;  %v810_v20 = vcvt.f32.s32 %v809_v18 }
 0xb5f   : > { %v818_v21 = vsel %vm814_vm9, inf, %v761_v39  ;;  %v819_v22 = vsel %vm815_vm10, inf, %v762_v43 }
 0xb60   : > { %v813_v23 = vadd.s32 %v812_v19, %v810_v20  ;;  %v825_v24 = vmin.f32 %v818_v21, %v819_v22 }
 0xb62   : > { %vm816_vm11 = vcmp.eq.s32.totalorder %v1912_v40, %v813_v23  ;;  %vm817_vm12 = vcmp.eq.s32.totalorder %v1915_v41, %v813_v23  ;;  %826 = vmin.xlane.f32.xlu0 %v825_v24 }
 0xb63   : > { %v820_v25 = vsel %vm816_vm11, inf, %v763_v47  ;;  %v821_v26 = vsel %vm817_vm12, inf, %v764_v48 }
 0xb64   : > { %v828_v27 = vmin.f32 %v820_v25, %v821_v26 }
 0xb66   : > { %829 = vmin.xlane.f32.xlu1 %v828_v27 }
 0xbef   : > { %v2013_v29 = vpop.xlane.xlu0 %826 }
 0xbf0   : > { %vm831_vm13 = vcmp.eq.f32.partialorder %v818_v21, %v2013_v29  ;;  %vm832_vm14 = vcmp.eq.f32.partialorder %v819_v22, %v2013_v29 }
 0xbf1   : > { %v835_v30 = vsel %vm831_vm13, %v1912_v40, 256  ;;  %v836_v32 = vsel %vm832_vm14, %v1915_v41, 256 }
 0xbf2   : > { %vm839_vm15 = vcmp.lt.s32.totalorder %v835_v30, %v836_v32 }
 0xbf3   : > { %v2019_v33 = vpop.xlane.xlu1 %829  ;;  %v840_v34 = vsel %vm839_vm15, %v835_v30, %v836_v32 }
 0xbf4   : > { %vm833_vm0 = vcmp.eq.f32.partialorder %v820_v25, %v2019_v33  ;;  %vm834_vm1 = vcmp.eq.f32.partialorder %v821_v26, %v2019_v33  ;;  %v842_v35 = vshra.s32 %v840_v34, 16  ;;  %v841_v46 = vand.u32 65535, %v840_v34 }
 0xbf5   : > { %v837_v36 = vsel %vm833_vm0, %v1912_v40, 256  ;;  %v838_v37 = vsel %vm834_vm1, %v1915_v41, 256 }
 0xbf6   : > { %v844_v38 = vcvt.s32.f32 %v842_v35  ;;  %vm855_vm2 = vcmp.lt.s32.totalorder %v837_v36, %v838_v37  ;;  %v843_v48 = vcvt.s32.f32 %v841_v46 }
 0xbf7   : > { %v856_v39 = vsel %vm855_vm2, %v837_v36, %v838_v37 }
 0xbf8   : > { %845 = vmin.xlane.f32.xlu0 %v844_v38  ;;  %v858_v43 = vshra.s32 %v856_v39, 16  ;;  %v857_v49 = vand.u32 65535, %v856_v39 }
 0xbfa   : > { %v860_v44 = vcvt.s32.f32 %v858_v43  ;;  %v859_v55 = vcvt.s32.f32 %v857_v49 }
 0xbfc   : > { %861 = vmin.xlane.f32.xlu1 %v860_v44 }
 0xc85   : > { %v846_v47 = vpop.xlane.xlu0 %845 }
 0xc86   : > { %vm847_vm3 = vcmp.eq.f32.partialorder %v844_v38, %v846_v47  ;;  %v852_v58 = vcvt.f32.s32 %v846_v47 }
 0xc87   : > { %v848_v51 = vsel %vm847_vm3, %v843_v48, inf }
 0xc88   : > { %849 = vmin.xlane.f32.xlu0 %v848_v51  ;;  %v853_v60 = vshll.u32 %v852_v58, 16 }
 0xc89   : > { %v862_v52 = vpop.xlane.xlu1 %861 }
 0xc8a   : > { %vm863_vm4 = vcmp.eq.f32.partialorder %v860_v44, %v862_v52  ;;  %v868_v61 = vcvt.f32.s32 %v862_v52 }
 0xc8b   : > { %v864_v56 = vsel %vm863_vm4, %v859_v55, inf }
 0xc8c   : > { %865 = vmin.xlane.f32.xlu1 %v864_v56  ;;  %v869_v1 = vshll.u32 %v868_v61, 16 }
 0xd15   : > { %v850_v59 = vpop.xlane.xlu0 %849 }
 0xd16   : > { %v851_v62 = vcvt.f32.s32 %v850_v59 }
 0xd18   : > { %v854_v63 = vadd.s32 %v853_v60, %v851_v62 }
 0xd19   : > { %v866_v0 = vpop.xlane.xlu1 %865 }
 0xd1a   : > { %vm871_vm5 = vcmp.eq.s32.totalorder %v1912_v40, %v854_v63  ;;  %vm872_vm6 = vcmp.eq.s32.totalorder %v1915_v41, %v854_v63  ;;  %v867_v2 = vcvt.f32.s32 %v866_v0 }
 0xd1b   : > { %v875_v3 = vsel %vm871_vm5, inf, %v818_v21  ;;  %v876_v4 = vsel %vm872_vm6, inf, %v819_v22 }
 0xd1c   : > { %v870_v5 = vadd.s32 %v869_v1, %v867_v2  ;;  %v882_v7 = vmin.f32 %v875_v3, %v876_v4 }
 0xd1e   : > { %vm873_vm7 = vcmp.eq.s32.totalorder %v1912_v40, %v870_v5  ;;  %vm874_vm8 = vcmp.eq.s32.totalorder %v1915_v41, %v870_v5  ;;  %883 = vmin.xlane.f32.xlu0 %v882_v7 }
 0xd1f   : > { %v877_v8 = vsel %vm873_vm7, inf, %v820_v25  ;;  %v878_v10 = vsel %vm874_vm8, inf, %v821_v26 }
 0xd20   : > { %v885_v11 = vmin.f32 %v877_v8, %v878_v10 }
 0xd22   : > { %886 = vmin.xlane.f32.xlu1 %v885_v11 }
 0xdab   : > { %v2029_v12 = vpop.xlane.xlu0 %883 }
 0xdac   : > { %vm888_vm9 = vcmp.eq.f32.partialorder %v875_v3, %v2029_v12  ;;  %vm889_vm10 = vcmp.eq.f32.partialorder %v876_v4, %v2029_v12 }
 0xdad   : > { %v892_v13 = vsel %vm888_vm9, %v1912_v40, 256  ;;  %v893_v15 = vsel %vm889_vm10, %v1915_v41, 256 }
 0xdae   : > { %vm896_vm11 = vcmp.lt.s32.totalorder %v892_v13, %v893_v15 }
 0xdaf   : > { %v2035_v16 = vpop.xlane.xlu1 %886  ;;  %v897_v18 = vsel %vm896_vm11, %v892_v13, %v893_v15 }
 0xdb0   : > { %vm890_vm12 = vcmp.eq.f32.partialorder %v877_v8, %v2035_v16  ;;  %vm891_vm13 = vcmp.eq.f32.partialorder %v878_v10, %v2035_v16  ;;  %v899_v19 = vshra.s32 %v897_v18, 16  ;;  %v898_v26 = vand.u32 65535, %v897_v18 }
 0xdb1   : > { %v894_v20 = vsel %vm890_vm12, %v1912_v40, 256  ;;  %v895_v21 = vsel %vm891_vm13, %v1915_v41, 256 }
 0xdb2   : > { %v901_v22 = vcvt.s32.f32 %v899_v19  ;;  %vm912_vm14 = vcmp.lt.s32.totalorder %v894_v20, %v895_v21  ;;  %v900_v30 = vcvt.s32.f32 %v898_v26 }
 0xdb3   : > { %v913_v23 = vsel %vm912_vm14, %v894_v20, %v895_v21 }
 0xdb4   : > { %902 = vmin.xlane.f32.xlu0 %v901_v22  ;;  %v915_v24 = vshra.s32 %v913_v23, 16  ;;  %v914_v32 = vand.u32 65535, %v913_v23 }
 0xdb6   : > { %v917_v25 = vcvt.s32.f32 %v915_v24  ;;  %v916_v36 = vcvt.s32.f32 %v914_v32 }
 0xdb8   : > { %918 = vmin.xlane.f32.xlu1 %v917_v25 }
 0xe41   : > { %v903_v27 = vpop.xlane.xlu0 %902 }
 0xe42   : > { %vm904_vm15 = vcmp.eq.f32.partialorder %v901_v22, %v903_v27  ;;  %v909_v38 = vcvt.f32.s32 %v903_v27 }
 0xe43   : > { %v905_v34 = vsel %vm904_vm15, %v900_v30, inf }
 0xe44   : > { %906 = vmin.xlane.f32.xlu0 %v905_v34  ;;  %v910_v43 = vshll.u32 %v909_v38, 16 }
 0xe45   : > { %v919_v35 = vpop.xlane.xlu1 %918 }
 0xe46   : > { %vm920_vm0 = vcmp.eq.f32.partialorder %v917_v25, %v919_v35  ;;  %v925_v44 = vcvt.f32.s32 %v919_v35 }
 0xe47   : > { %v921_v37 = vsel %vm920_vm0, %v916_v36, inf }
 0xe48   : > { %922 = vmin.xlane.f32.xlu1 %v921_v37  ;;  %v926_v49 = vshll.u32 %v925_v44, 16 }
 0xed1   : > { %v907_v39 = vpop.xlane.xlu0 %906 }
 0xed2   : > { %v908_v46 = vcvt.f32.s32 %v907_v39 }
 0xed4   : > { %v911_v47 = vadd.s32 %v910_v43, %v908_v46 }
 0xed5   : > { %v923_v48 = vpop.xlane.xlu1 %922 }
 0xed6   : > { %vm928_vm1 = vcmp.eq.s32.totalorder %v1912_v40, %v911_v47  ;;  %vm929_vm2 = vcmp.eq.s32.totalorder %v1915_v41, %v911_v47  ;;  %v924_v51 = vcvt.f32.s32 %v923_v48 }
 0xed7   : > { %v932_v52 = vsel %vm928_vm1, inf, %v875_v3  ;;  %v933_v55 = vsel %vm929_vm2, inf, %v876_v4 }
 0xed8   : > { %v927_v56 = vadd.s32 %v926_v49, %v924_v51  ;;  %v939_v58 = vmin.f32 %v932_v52, %v933_v55 }
 0xeda   : > { %vm930_vm3 = vcmp.eq.s32.totalorder %v1912_v40, %v927_v56  ;;  %vm931_vm4 = vcmp.eq.s32.totalorder %v1915_v41, %v927_v56  ;;  %940 = vmin.xlane.f32.xlu0 %v939_v58 }
 0xedb   : > { %v934_v59 = vsel %vm930_vm3, inf, %v877_v8  ;;  %v935_v60 = vsel %vm931_vm4, inf, %v878_v10 }
 0xedc   : > { %v942_v61 = vmin.f32 %v934_v59, %v935_v60 }
 0xede   : > { %943 = vmin.xlane.f32.xlu1 %v942_v61 }
 0xf67   : > { %v2045_v62 = vpop.xlane.xlu0 %940 }
 0xf68   : > { %vm945_vm5 = vcmp.eq.f32.partialorder %v932_v52, %v2045_v62  ;;  %vm946_vm6 = vcmp.eq.f32.partialorder %v933_v55, %v2045_v62 }
 0xf69   : > { %v949_v63 = vsel %vm945_vm5, %v1912_v40, 256  ;;  %v950_v0 = vsel %vm946_vm6, %v1915_v41, 256 }
 0xf6a   : > { %vm953_vm7 = vcmp.lt.s32.totalorder %v949_v63, %v950_v0 }
 0xf6b   : > { %v2051_v1 = vpop.xlane.xlu1 %943  ;;  %v954_v2 = vsel %vm953_vm7, %v949_v63, %v950_v0 }
 0xf6c   : > { %vm947_vm8 = vcmp.eq.f32.partialorder %v934_v59, %v2051_v1  ;;  %vm948_vm9 = vcmp.eq.f32.partialorder %v935_v60, %v2051_v1  ;;  %v956_v3 = vshra.s32 %v954_v2, 16  ;;  %v955_v13 = vand.u32 65535, %v954_v2 }
 0xf6d   : > { %v951_v4 = vsel %vm947_vm8, %v1912_v40, 256  ;;  %v952_v5 = vsel %vm948_vm9, %v1915_v41, 256 }
 0xf6e   : > { %v958_v7 = vcvt.s32.f32 %v956_v3  ;;  %vm969_vm10 = vcmp.lt.s32.totalorder %v951_v4, %v952_v5  ;;  %v957_v18 = vcvt.s32.f32 %v955_v13 }
 0xf6f   : > { %v970_v8 = vsel %vm969_vm10, %v951_v4, %v952_v5 }
 0xf70   : > { %959 = vmin.xlane.f32.xlu0 %v958_v7  ;;  %v972_v10 = vshra.s32 %v970_v8, 16  ;;  %v971_v19 = vand.u32 65535, %v970_v8 }
 0xf72   : > { %v974_v11 = vcvt.s32.f32 %v972_v10  ;;  %v973_v22 = vcvt.s32.f32 %v971_v19 }
 0xf74   : > { %975 = vmin.xlane.f32.xlu1 %v974_v11 }
 0xffd   : > { %v960_v15 = vpop.xlane.xlu0 %959 }
 0xffe   : > { %vm961_vm11 = vcmp.eq.f32.partialorder %v958_v7, %v960_v15  ;;  %v966_v24 = vcvt.f32.s32 %v960_v15 }
 0xfff   : > { %v962_v20 = vsel %vm961_vm11, %v957_v18, inf }
0x1000   : > { %963 = vmin.xlane.f32.xlu0 %v962_v20  ;;  %v967_v26 = vshll.u32 %v966_v24, 16 }
0x1001   : > { %v976_v21 = vpop.xlane.xlu1 %975 }
0x1002   : > { %vm977_vm12 = vcmp.eq.f32.partialorder %v974_v11, %v976_v21  ;;  %v982_v27 = vcvt.f32.s32 %v976_v21 }
0x1003   : > { %v978_v23 = vsel %vm977_vm12, %v973_v22, inf }
0x1004   : > { %979 = vmin.xlane.f32.xlu1 %v978_v23  ;;  %v983_v35 = vshll.u32 %v982_v27, 16 }
0x108d   : > { %v964_v25 = vpop.xlane.xlu0 %963 }
0x108e   : > { %v965_v30 = vcvt.f32.s32 %v964_v25 }
0x1090   : > { %v968_v32 = vadd.s32 %v967_v26, %v965_v30 }
0x1091   : > { %v980_v34 = vpop.xlane.xlu1 %979 }
0x1092   : > { %vm985_vm13 = vcmp.eq.s32.totalorder %v1912_v40, %v968_v32  ;;  %vm986_vm14 = vcmp.eq.s32.totalorder %v1915_v41, %v968_v32  ;;  %v981_v36 = vcvt.f32.s32 %v980_v34 }
0x1093   : > { %v989_v37 = vsel %vm985_vm13, inf, %v932_v52  ;;  %v990_v38 = vsel %vm986_vm14, inf, %v933_v55 }
0x1094   : > { %v984_v39 = vadd.s32 %v983_v35, %v981_v36  ;;  %v996_v43 = vmin.f32 %v989_v37, %v990_v38 }
0x1096   : > { %vm987_vm15 = vcmp.eq.s32.totalorder %v1912_v40, %v984_v39  ;;  %vm988_vm0 = vcmp.eq.s32.totalorder %v1915_v41, %v984_v39  ;;  %997 = vmin.xlane.f32.xlu0 %v996_v43 }
0x1097   : > { %v991_v44 = vsel %vm987_vm15, inf, %v934_v59  ;;  %v992_v46 = vsel %vm988_vm0, inf, %v935_v60 }
0x1098   : > { %v999_v47 = vmin.f32 %v991_v44, %v992_v46 }
0x109a   : > { %1000 = vmin.xlane.f32.xlu1 %v999_v47 }
0x1123   : > { %v2061_v48 = vpop.xlane.xlu0 %997 }
0x1124   : > { %vm1002_vm1 = vcmp.eq.f32.partialorder %v989_v37, %v2061_v48  ;;  %vm1003_vm2 = vcmp.eq.f32.partialorder %v990_v38, %v2061_v48 }
0x1125   : > { %v1006_v49 = vsel %vm1002_vm1, %v1912_v40, 256  ;;  %v1007_v51 = vsel %vm1003_vm2, %v1915_v41, 256 }
0x1126   : > { %vm1010_vm3 = vcmp.lt.s32.totalorder %v1006_v49, %v1007_v51 }
0x1127   : > { %v2067_v52 = vpop.xlane.xlu1 %1000  ;;  %v1011_v55 = vsel %vm1010_vm3, %v1006_v49, %v1007_v51 }
0x1128   : > { %vm1004_vm4 = vcmp.eq.f32.partialorder %v991_v44, %v2067_v52  ;;  %vm1005_vm5 = vcmp.eq.f32.partialorder %v992_v46, %v2067_v52  ;;  %v1013_v56 = vshra.s32 %v1011_v55, 16  ;;  %v1012_v2 = vand.u32 65535, %v1011_v55 }
0x1129   : > { %v1008_v58 = vsel %vm1004_vm4, %v1912_v40, 256  ;;  %v1009_v59 = vsel %vm1005_vm5, %v1915_v41, 256 }
0x112a   : > { %v1015_v60 = vcvt.s32.f32 %v1013_v56  ;;  %vm1026_vm6 = vcmp.lt.s32.totalorder %v1008_v58, %v1009_v59  ;;  %v1014_v4 = vcvt.s32.f32 %v1012_v2 }
0x112b   : > { %v1027_v61 = vsel %vm1026_vm6, %v1008_v58, %v1009_v59 }
0x112c   : > { %1016 = vmin.xlane.f32.xlu0 %v1015_v60  ;;  %v1029_v63 = vshra.s32 %v1027_v61, 16  ;;  %v1028_v5 = vand.u32 65535, %v1027_v61 }
0x112e   : > { %v1031_v0 = vcvt.s32.f32 %v1029_v63  ;;  %v1030_v10 = vcvt.s32.f32 %v1028_v5 }
0x1130   : > { %1032 = vmin.xlane.f32.xlu1 %v1031_v0 }
0x11b9   : > { %v1017_v3 = vpop.xlane.xlu0 %1016 }
0x11ba   : > { %vm1018_vm7 = vcmp.eq.f32.partialorder %v1015_v60, %v1017_v3  ;;  %v1023_v13 = vcvt.f32.s32 %v1017_v3 }
0x11bb   : > { %v1019_v7 = vsel %vm1018_vm7, %v1014_v4, inf }
0x11bc   : > { %1020 = vmin.xlane.f32.xlu0 %v1019_v7  ;;  %v1024_v18 = vshll.u32 %v1023_v13, 16 }
0x11bd   : > { %v1033_v8 = vpop.xlane.xlu1 %1032 }
0x11be   : > { %vm1034_vm8 = vcmp.eq.f32.partialorder %v1031_v0, %v1033_v8  ;;  %v1039_v19 = vcvt.f32.s32 %v1033_v8 }
0x11bf   : > { %v1035_v11 = vsel %vm1034_vm8, %v1030_v10, inf }
0x11c0   : > { %1036 = vmin.xlane.f32.xlu1 %v1035_v11  ;;  %v1040_v23 = vshll.u32 %v1039_v19, 16 }
0x1249   : > { %v1021_v15 = vpop.xlane.xlu0 %1020 }
0x124a   : > { %v1022_v20 = vcvt.f32.s32 %v1021_v15 }
0x124c   : > { %v1025_v21 = vadd.s32 %v1024_v18, %v1022_v20 }
0x124d   : > { %v1037_v22 = vpop.xlane.xlu1 %1036 }
0x124e   : > { %vm1042_vm9 = vcmp.eq.s32.totalorder %v1912_v40, %v1025_v21  ;;  %vm1043_vm10 = vcmp.eq.s32.totalorder %v1915_v41, %v1025_v21  ;;  %v1038_v24 = vcvt.f32.s32 %v1037_v22 }
0x124f   : > { %v1046_v25 = vsel %vm1042_vm9, inf, %v989_v37  ;;  %v1047_v26 = vsel %vm1043_vm10, inf, %v990_v38 }
0x1250   : > { %v1041_v27 = vadd.s32 %v1040_v23, %v1038_v24  ;;  %v1053_v30 = vmin.f32 %v1046_v25, %v1047_v26 }
0x1252   : > { %vm1044_vm11 = vcmp.eq.s32.totalorder %v1912_v40, %v1041_v27  ;;  %vm1045_vm12 = vcmp.eq.s32.totalorder %v1915_v41, %v1041_v27  ;;  %1054 = vmin.xlane.f32.xlu0 %v1053_v30 }
0x1253   : > { %v1048_v32 = vsel %vm1044_vm11, inf, %v991_v44  ;;  %v1049_v34 = vsel %vm1045_vm12, inf, %v992_v46 }
0x1254   : > { %v1056_v35 = vmin.f32 %v1048_v32, %v1049_v34 }
0x1256   : > { %1057 = vmin.xlane.f32.xlu1 %v1056_v35 }
0x12df   : > { %v2077_v36 = vpop.xlane.xlu0 %1054 }
0x12e0   : > { %vm1059_vm13 = vcmp.eq.f32.partialorder %v1046_v25, %v2077_v36  ;;  %vm1060_vm14 = vcmp.eq.f32.partialorder %v1047_v26, %v2077_v36 }
0x12e1   : > { %v1063_v37 = vsel %vm1059_vm13, %v1912_v40, 256  ;;  %v1064_v38 = vsel %vm1060_vm14, %v1915_v41, 256 }
0x12e2   : > { %vm1067_vm15 = vcmp.lt.s32.totalorder %v1063_v37, %v1064_v38 }
0x12e3   : > { %v2083_v39 = vpop.xlane.xlu1 %1057  ;;  %v1068_v43 = vsel %vm1067_vm15, %v1063_v37, %v1064_v38 }
0x12e4   : > { %vm1061_vm0 = vcmp.eq.f32.partialorder %v1048_v32, %v2083_v39  ;;  %vm1062_vm1 = vcmp.eq.f32.partialorder %v1049_v34, %v2083_v39  ;;  %v1070_v44 = vshra.s32 %v1068_v43, 16  ;;  %v1069_v58 = vand.u32 65535, %v1068_v43 }
0x12e5   : > { %v1065_v46 = vsel %vm1061_vm0, %v1912_v40, 256  ;;  %v1066_v47 = vsel %vm1062_vm1, %v1915_v41, 256 }
0x12e6   : > { %v1072_v49 = vcvt.s32.f32 %v1070_v44  ;;  %vm1083_vm2 = vcmp.lt.s32.totalorder %v1065_v46, %v1066_v47  ;;  %v1071_v60 = vcvt.s32.f32 %v1069_v58 }
0x12e7   : > { %v1084_v51 = vsel %vm1083_vm2, %v1065_v46, %v1066_v47 }
0x12e8   : > { %1073 = vmin.xlane.f32.xlu0 %v1072_v49  ;;  %v1086_v55 = vshra.s32 %v1084_v51, 16  ;;  %v1085_v61 = vand.u32 65535, %v1084_v51 }
0x12ea   : > { %v1088_v56 = vcvt.s32.f32 %v1086_v55  ;;  %v1087_v2 = vcvt.s32.f32 %v1085_v61 }
0x12ec   : > { %1089 = vmin.xlane.f32.xlu1 %v1088_v56 }
0x1375   : > { %v1074_v59 = vpop.xlane.xlu0 %1073 }
0x1376   : > { %vm1075_vm3 = vcmp.eq.f32.partialorder %v1072_v49, %v1074_v59  ;;  %v1080_v4 = vcvt.f32.s32 %v1074_v59 }
0x1377   : > { %v1076_v63 = vsel %vm1075_vm3, %v1071_v60, inf }
0x1378   : > { %1077 = vmin.xlane.f32.xlu0 %v1076_v63  ;;  %v1081_v7 = vshll.u32 %v1080_v4, 16 }
0x1379   : > { %v1090_v0 = vpop.xlane.xlu1 %1089 }
0x137a   : > { %vm1091_vm4 = vcmp.eq.f32.partialorder %v1088_v56, %v1090_v0  ;;  %v1096_v8 = vcvt.f32.s32 %v1090_v0 }
0x137b   : > { %v1092_v3 = vsel %vm1091_vm4, %v1087_v2, inf }
0x137c   : > { %1093 = vmin.xlane.f32.xlu1 %v1092_v3  ;;  %v1097_v15 = vshll.u32 %v1096_v8, 16 }
0x1405   : > { %v1078_v5 = vpop.xlane.xlu0 %1077 }
0x1406   : > { %v1079_v10 = vcvt.f32.s32 %v1078_v5 }
0x1408   : > { %v1082_v11 = vadd.s32 %v1081_v7, %v1079_v10 }
0x1409   : > { %v1094_v13 = vpop.xlane.xlu1 %1093 }
0x140a   : > { %vm1099_vm5 = vcmp.eq.s32.totalorder %v1912_v40, %v1082_v11  ;;  %vm1100_vm6 = vcmp.eq.s32.totalorder %v1915_v41, %v1082_v11  ;;  %v1095_v18 = vcvt.f32.s32 %v1094_v13 }
0x140b   : > { %v1103_v19 = vsel %vm1099_vm5, inf, %v1046_v25  ;;  %v1104_v20 = vsel %vm1100_vm6, inf, %v1047_v26 }
0x140c   : > { %v1098_v21 = vadd.s32 %v1097_v15, %v1095_v18  ;;  %v1110_v22 = vmin.f32 %v1103_v19, %v1104_v20 }
0x140e   : > { %vm1101_vm7 = vcmp.eq.s32.totalorder %v1912_v40, %v1098_v21  ;;  %vm1102_vm8 = vcmp.eq.s32.totalorder %v1915_v41, %v1098_v21  ;;  %1111 = vmin.xlane.f32.xlu0 %v1110_v22 }
0x140f   : > { %v1105_v23 = vsel %vm1101_vm7, inf, %v1048_v32  ;;  %v1106_v24 = vsel %vm1102_vm8, inf, %v1049_v34 }
0x1410   : > { %v1113_v27 = vmin.f32 %v1105_v23, %v1106_v24 }
0x1412   : > { %1114 = vmin.xlane.f32.xlu1 %v1113_v27 }
0x149b   : > { %v2093_v30 = vpop.xlane.xlu0 %1111 }
0x149c   : > { %vm1116_vm9 = vcmp.eq.f32.partialorder %v1103_v19, %v2093_v30  ;;  %vm1117_vm10 = vcmp.eq.f32.partialorder %v1104_v20, %v2093_v30 }
0x149d   : > { %v1120_v25 = vsel %vm1116_vm9, %v1912_v40, 256  ;;  %v1121_v26 = vsel %vm1117_vm10, %v1915_v41, 256 }
0x149e   : > { %vm1124_vm11 = vcmp.lt.s32.totalorder %v1120_v25, %v1121_v26 }
0x149f   : > { %v2099_v35 = vpop.xlane.xlu1 %1114  ;;  %v1125_v37 = vsel %vm1124_vm11, %v1120_v25, %v1121_v26 }
0x14a0   : > { %vm1118_vm12 = vcmp.eq.f32.partialorder %v1105_v23, %v2099_v35  ;;  %vm1119_vm13 = vcmp.eq.f32.partialorder %v1106_v24, %v2099_v35  ;;  %v1127_v32 = vshra.s32 %v1125_v37, 16  ;;  %v1126_v49 = vand.u32 65535, %v1125_v37 }
0x14a1   : > { %v1122_v34 = vsel %vm1118_vm12, %v1912_v40, 256  ;;  %v1123_v38 = vsel %vm1119_vm13, %v1915_v41, 256 }
0x14a2   : > { %v1129_v43 = vcvt.s32.f32 %v1127_v32  ;;  %vm1140_vm14 = vcmp.lt.s32.totalorder %v1122_v34, %v1123_v38  ;;  %v1128_v55 = vcvt.s32.f32 %v1126_v49 }
0x14a3   : > { %v1141_v44 = vsel %vm1140_vm14, %v1122_v34, %v1123_v38 }
0x14a4   : > { %1130 = vmin.xlane.f32.xlu0 %v1129_v43  ;;  %v1143_v46 = vshra.s32 %v1141_v44, 16  ;;  %v1142_v56 = vand.u32 65535, %v1141_v44 }
0x14a6   : > { %v1145_v47 = vcvt.s32.f32 %v1143_v46  ;;  %v1144_v60 = vcvt.s32.f32 %v1142_v56 }
0x14a8   : > { %1146 = vmin.xlane.f32.xlu1 %v1145_v47 }
0x1531   : > { %v1131_v51 = vpop.xlane.xlu0 %1130 }
0x1532   : > { %vm1132_vm15 = vcmp.eq.f32.partialorder %v1129_v43, %v1131_v51  ;;  %v1137_v63 = vcvt.f32.s32 %v1131_v51 }
0x1533   : > { %v1133_v58 = vsel %vm1132_vm15, %v1128_v55, inf }
0x1534   : > { %1134 = vmin.xlane.f32.xlu0 %v1133_v58  ;;  %v1138_v2 = vshll.u32 %v1137_v63, 16 }
0x1535   : > { %v1147_v59 = vpop.xlane.xlu1 %1146 }
0x1536   : > { %vm1148_vm0 = vcmp.eq.f32.partialorder %v1145_v47, %v1147_v59  ;;  %v1153_v3 = vcvt.f32.s32 %v1147_v59 }
0x1537   : > { %v1149_v61 = vsel %vm1148_vm0, %v1144_v60, inf }
0x1538   : > { %1150 = vmin.xlane.f32.xlu1 %v1149_v61  ;;  %v1154_v8 = vshll.u32 %v1153_v3, 16 }
0x15c1   : > { %v1135_v0 = vpop.xlane.xlu0 %1134 }
0x15c2   : > { %v1136_v4 = vcvt.f32.s32 %v1135_v0 }
0x15c4   : > { %v1139_v5 = vadd.s32 %v1138_v2, %v1136_v4 }
0x15c5   : > { %v1151_v7 = vpop.xlane.xlu1 %1150 }
0x15c6   : > { %vm1156_vm1 = vcmp.eq.s32.totalorder %v1912_v40, %v1139_v5  ;;  %vm1157_vm2 = vcmp.eq.s32.totalorder %v1915_v41, %v1139_v5  ;;  %v1152_v10 = vcvt.f32.s32 %v1151_v7 }
0x15c7   : > { %v1160_v11 = vsel %vm1156_vm1, inf, %v1103_v19  ;;  %v1161_v13 = vsel %vm1157_vm2, inf, %v1104_v20 }
0x15c8   : > { %v1155_v15 = vadd.s32 %v1154_v8, %v1152_v10  ;;  %v1167_v18 = vmin.f32 %v1160_v11, %v1161_v13 }
0x15ca   : > { %vm1158_vm3 = vcmp.eq.s32.totalorder %v1912_v40, %v1155_v15  ;;  %vm1159_vm4 = vcmp.eq.s32.totalorder %v1915_v41, %v1155_v15  ;;  %1168 = vmin.xlane.f32.xlu0 %v1167_v18 }
0x15cb   : > { %v1162_v21 = vsel %vm1158_vm3, inf, %v1105_v23  ;;  %v1163_v22 = vsel %vm1159_vm4, inf, %v1106_v24 }
0x15cc   : > { %v1170_v27 = vmin.f32 %v1162_v21, %v1163_v22 }
0x15ce   : > { %1171 = vmin.xlane.f32.xlu1 %v1170_v27 }
0x1657   : > { %v2109_v25 = vpop.xlane.xlu0 %1168 }
0x1658   : > { %vm1173_vm5 = vcmp.eq.f32.partialorder %v1160_v11, %v2109_v25  ;;  %vm1174_vm6 = vcmp.eq.f32.partialorder %v1161_v13, %v2109_v25 }
0x1659   : > { %v1177_v19 = vsel %vm1173_vm5, %v1912_v40, 256  ;;  %v1178_v20 = vsel %vm1174_vm6, %v1915_v41, 256 }
0x165a   : > { %vm1181_vm7 = vcmp.lt.s32.totalorder %v1177_v19, %v1178_v20 }
0x165b   : > { %v2115_v26 = vpop.xlane.xlu1 %1171  ;;  %v1182_v37 = vsel %vm1181_vm7, %v1177_v19, %v1178_v20 }
0x165c   : > { %vm1175_vm8 = vcmp.eq.f32.partialorder %v1162_v21, %v2115_v26  ;;  %vm1176_vm9 = vcmp.eq.f32.partialorder %v1163_v22, %v2115_v26  ;;  %v1184_v23 = vshra.s32 %v1182_v37, 16  ;;  %v1183_v46 = vand.u32 65535, %v1182_v37 }
0x165d   : > { %v1179_v24 = vsel %vm1175_vm8, %v1912_v40, 256  ;;  %v1180_v32 = vsel %vm1176_vm9, %v1915_v41, 256 }
0x165e   : > { %v1186_v34 = vcvt.s32.f32 %v1184_v23  ;;  %vm1197_vm10 = vcmp.lt.s32.totalorder %v1179_v24, %v1180_v32  ;;  %v1185_v49 = vcvt.s32.f32 %v1183_v46 }
0x165f   : > { %v1198_v38 = vsel %vm1197_vm10, %v1179_v24, %v1180_v32 }
0x1660   : > { %1187 = vmin.xlane.f32.xlu0 %v1186_v34  ;;  %v1200_v43 = vshra.s32 %v1198_v38, 16  ;;  %v1199_v51 = vand.u32 65535, %v1198_v38 }
0x1662   : > { %v1202_v44 = vcvt.s32.f32 %v1200_v43  ;;  %v1201_v58 = vcvt.s32.f32 %v1199_v51 }
0x1664   : > { %1203 = vmin.xlane.f32.xlu1 %v1202_v44 }
0x16ed   : > { %v1188_v47 = vpop.xlane.xlu0 %1187 }
0x16ee   : > { %vm1189_vm11 = vcmp.eq.f32.partialorder %v1186_v34, %v1188_v47  ;;  %v1194_v60 = vcvt.f32.s32 %v1188_v47 }
0x16ef   : > { %v1190_v55 = vsel %vm1189_vm11, %v1185_v49, inf }
0x16f0   : > { %1191 = vmin.xlane.f32.xlu0 %v1190_v55  ;;  %v1195_v63 = vshll.u32 %v1194_v60, 16 }
0x16f1   : > { %v1204_v56 = vpop.xlane.xlu1 %1203 }
0x16f2   : > { %vm1205_vm12 = vcmp.eq.f32.partialorder %v1202_v44, %v1204_v56  ;;  %v1210_v0 = vcvt.f32.s32 %v1204_v56 }
0x16f3   : > { %v1206_v59 = vsel %vm1205_vm12, %v1201_v58, inf }
0x16f4   : > { %1207 = vmin.xlane.f32.xlu1 %v1206_v59  ;;  %v1211_v5 = vshll.u32 %v1210_v0, 16 }
0x177d   : > { %v1192_v61 = vpop.xlane.xlu0 %1191 }
0x177e   : > { %v1193_v2 = vcvt.f32.s32 %v1192_v61 }
0x1780   : > { %v1196_v3 = vadd.s32 %v1195_v63, %v1193_v2 }
0x1781   : > { %v1208_v4 = vpop.xlane.xlu1 %1207 }
0x1782   : > { %vm1213_vm13 = vcmp.eq.s32.totalorder %v1912_v40, %v1196_v3  ;;  %vm1214_vm14 = vcmp.eq.s32.totalorder %v1915_v41, %v1196_v3  ;;  %v1209_v7 = vcvt.f32.s32 %v1208_v4 }
0x1783   : > { %v1217_v8 = vsel %vm1213_vm13, inf, %v1160_v11  ;;  %v1218_v10 = vsel %vm1214_vm14, inf, %v1161_v13 }
0x1784   : > { %v1212_v15 = vadd.s32 %v1211_v5, %v1209_v7  ;;  %v1224_v18 = vmin.f32 %v1217_v8, %v1218_v10 }
0x1786   : > { %vm1215_vm15 = vcmp.eq.s32.totalorder %v1912_v40, %v1212_v15  ;;  %vm1216_vm0 = vcmp.eq.s32.totalorder %v1915_v41, %v1212_v15  ;;  %1225 = vmin.xlane.f32.xlu0 %v1224_v18 }
0x1787   : > { %v1219_v27 = vsel %vm1215_vm15, inf, %v1162_v21  ;;  %v1220_v19 = vsel %vm1216_vm0, inf, %v1163_v22 }
0x1788   : > { %v1227_v20 = vmin.f32 %v1219_v27, %v1220_v19 }
0x178a   : > { %1228 = vmin.xlane.f32.xlu1 %v1227_v20 }
0x1813   : > { %v2125_v37 = vpop.xlane.xlu0 %1225 }
0x1814   : > { %vm1230_vm1 = vcmp.eq.f32.partialorder %v1217_v8, %v2125_v37  ;;  %vm1231_vm2 = vcmp.eq.f32.partialorder %v1218_v10, %v2125_v37 }
0x1815   : > { %v1234_v11 = vsel %vm1230_vm1, %v1912_v40, 256  ;;  %v1235_v13 = vsel %vm1231_vm2, %v1915_v41, 256 }
0x1816   : > { %vm1238_vm3 = vcmp.lt.s32.totalorder %v1234_v11, %v1235_v13 }
0x1817   : > { %v2131_v23 = vpop.xlane.xlu1 %1228  ;;  %v1239_v24 = vsel %vm1238_vm3, %v1234_v11, %v1235_v13 }
0x1818   : > { %vm1232_vm4 = vcmp.eq.f32.partialorder %v1219_v27, %v2131_v23  ;;  %vm1233_vm5 = vcmp.eq.f32.partialorder %v1220_v19, %v2131_v23  ;;  %v1241_v21 = vshra.s32 %v1239_v24, 16  ;;  %v1240_v46 = vand.u32 65535, %v1239_v24 }
0x1819   : > { %v1236_v22 = vsel %vm1232_vm4, %v1912_v40, 256  ;;  %v1237_v32 = vsel %vm1233_vm5, %v1915_v41, 256 }
0x181a   : > { %v1243_v34 = vcvt.s32.f32 %v1241_v21  ;;  %vm1254_vm6 = vcmp.lt.s32.totalorder %v1236_v22, %v1237_v32  ;;  %v1242_v49 = vcvt.s32.f32 %v1240_v46 }
0x181b   : > { %v1255_v38 = vsel %vm1254_vm6, %v1236_v22, %v1237_v32 }
0x181c   : > { %1244 = vmin.xlane.f32.xlu0 %v1243_v34  ;;  %v1257_v43 = vshra.s32 %v1255_v38, 16  ;;  %v1256_v51 = vand.u32 65535, %v1255_v38 }
0x181e   : > { %v1259_v44 = vcvt.s32.f32 %v1257_v43  ;;  %v1258_v58 = vcvt.s32.f32 %v1256_v51 }
0x1820   : > { %1260 = vmin.xlane.f32.xlu1 %v1259_v44 }
0x18a9   : > { %v1245_v47 = vpop.xlane.xlu0 %1244 }
0x18aa   : > { %vm1246_vm7 = vcmp.eq.f32.partialorder %v1243_v34, %v1245_v47  ;;  %v1251_v60 = vcvt.f32.s32 %v1245_v47 }
0x18ab   : > { %v1247_v55 = vsel %vm1246_vm7, %v1242_v49, inf }
0x18ac   : > { %1248 = vmin.xlane.f32.xlu0 %v1247_v55  ;;  %v1252_v63 = vshll.u32 %v1251_v60, 16 }
0x18ad   : > { %v1261_v56 = vpop.xlane.xlu1 %1260 }
0x18ae   : > { %vm1262_vm8 = vcmp.eq.f32.partialorder %v1259_v44, %v1261_v56  ;;  %v1267_v0 = vcvt.f32.s32 %v1261_v56 }
0x18af   : > { %v1263_v59 = vsel %vm1262_vm8, %v1258_v58, inf }
0x18b0   : > { %1264 = vmin.xlane.f32.xlu1 %v1263_v59  ;;  %v1268_v5 = vshll.u32 %v1267_v0, 16 }
0x1939   : > { %v1249_v61 = vpop.xlane.xlu0 %1248 }
0x193a   : > { %v1250_v2 = vcvt.f32.s32 %v1249_v61 }
0x193c   : > { %v1253_v3 = vadd.s32 %v1252_v63, %v1250_v2 }
0x193d   : > { %v1265_v4 = vpop.xlane.xlu1 %1264 }
0x193e   : > { %vm1270_vm9 = vcmp.eq.s32.totalorder %v1912_v40, %v1253_v3  ;;  %vm1271_vm10 = vcmp.eq.s32.totalorder %v1915_v41, %v1253_v3  ;;  %v1266_v7 = vcvt.f32.s32 %v1265_v4 }
0x193f   : > { %v1274_v15 = vsel %vm1270_vm9, inf, %v1217_v8  ;;  %v1275_v18 = vsel %vm1271_vm10, inf, %v1218_v10 }
0x1940   : > { %v1269_v20 = vadd.s32 %v1268_v5, %v1266_v7  ;;  %v1281_v11 = vmin.f32 %v1274_v15, %v1275_v18 }
0x1942   : > { %vm1272_vm11 = vcmp.eq.s32.totalorder %v1912_v40, %v1269_v20  ;;  %vm1273_vm12 = vcmp.eq.s32.totalorder %v1915_v41, %v1269_v20  ;;  %1282 = vmin.xlane.f32.xlu0 %v1281_v11 }
0x1943   : > { %v1276_v13 = vsel %vm1272_vm11, inf, %v1219_v27  ;;  %v1277_v24 = vsel %vm1273_vm12, inf, %v1220_v19 }
0x1944   : > { %v1284_v21 = vmin.f32 %v1276_v13, %v1277_v24 }
0x1946   : > { %1285 = vmin.xlane.f32.xlu1 %v1284_v21 }
0x19cf   : > { %v2141_v22 = vpop.xlane.xlu0 %1282 }
0x19d0   : > { %vm1287_vm13 = vcmp.eq.f32.partialorder %v1274_v15, %v2141_v22  ;;  %vm1288_vm14 = vcmp.eq.f32.partialorder %v1275_v18, %v2141_v22 }
0x19d1   : > { %v1291_v8 = vsel %vm1287_vm13, %v1912_v40, 256  ;;  %v1292_v10 = vsel %vm1288_vm14, %v1915_v41, 256 }
0x19d2   : > { %vm1295_vm15 = vcmp.lt.s32.totalorder %v1291_v8, %v1292_v10 }
0x19d3   : > { %v2147_v32 = vpop.xlane.xlu1 %1285  ;;  %v1296_v34 = vsel %vm1295_vm15, %v1291_v8, %v1292_v10 }
0x19d4   : > { %vm1289_vm0 = vcmp.eq.f32.partialorder %v1276_v13, %v2147_v32  ;;  %vm1290_vm1 = vcmp.eq.f32.partialorder %v1277_v24, %v2147_v32  ;;  %v1298_v27 = vshra.s32 %v1296_v34, 16  ;;  %v1297_v49 = vand.u32 65535, %v1296_v34 }
0x19d5   : > { %v1293_v19 = vsel %vm1289_vm0, %v1912_v40, 256  ;;  %v1294_v38 = vsel %vm1290_vm1, %v1915_v41, 256 }
0x19d6   : > { %v1300_v43 = vcvt.s32.f32 %v1298_v27  ;;  %vm1311_vm2 = vcmp.lt.s32.totalorder %v1293_v19, %v1294_v38  ;;  %v1299_v55 = vcvt.s32.f32 %v1297_v49 }
0x19d7   : > { %v1312_v44 = vsel %vm1311_vm2, %v1293_v19, %v1294_v38 }
0x19d8   : > { %1301 = vmin.xlane.f32.xlu0 %v1300_v43  ;;  %v1314_v46 = vshra.s32 %v1312_v44, 16  ;;  %v1313_v56 = vand.u32 65535, %v1312_v44 }
0x19da   : > { %v1316_v47 = vcvt.s32.f32 %v1314_v46  ;;  %v1315_v60 = vcvt.s32.f32 %v1313_v56 }
0x19dc   : > { %1317 = vmin.xlane.f32.xlu1 %v1316_v47 }
0x1a65   : > { %v1302_v51 = vpop.xlane.xlu0 %1301 }
0x1a66   : > { %vm1303_vm3 = vcmp.eq.f32.partialorder %v1300_v43, %v1302_v51  ;;  %v1308_v63 = vcvt.f32.s32 %v1302_v51 }
0x1a67   : > { %v1304_v58 = vsel %vm1303_vm3, %v1299_v55, inf }
0x1a68   : > { %1305 = vmin.xlane.f32.xlu0 %v1304_v58  ;;  %v1309_v2 = vshll.u32 %v1308_v63, 16 }
0x1a69   : > { %v1318_v59 = vpop.xlane.xlu1 %1317 }
0x1a6a   : > { %vm1319_vm4 = vcmp.eq.f32.partialorder %v1316_v47, %v1318_v59  ;;  %v1324_v3 = vcvt.f32.s32 %v1318_v59 }
0x1a6b   : > { %v1320_v61 = vsel %vm1319_vm4, %v1315_v60, inf }
0x1a6c   : > { %1321 = vmin.xlane.f32.xlu1 %v1320_v61  ;;  %v1325_v20 = vshll.u32 %v1324_v3, 16 }
0x1af5   : > { %v1306_v0 = vpop.xlane.xlu0 %1305 }
0x1af6   : > { %v1307_v4 = vcvt.f32.s32 %v1306_v0 }
0x1af8   : > { %v1310_v5 = vadd.s32 %v1309_v2, %v1307_v4 }
0x1af9   : > { %v1322_v7 = vpop.xlane.xlu1 %1321 }
0x1afa   : > { %vm1327_vm5 = vcmp.eq.s32.totalorder %v1912_v40, %v1310_v5  ;;  %vm1328_vm6 = vcmp.eq.s32.totalorder %v1915_v41, %v1310_v5  ;;  %v1323_v11 = vcvt.f32.s32 %v1322_v7 }
0x1afb   : > { %v1331_v21 = vsel %vm1327_vm5, inf, %v1274_v15  ;;  %v1332_v8 = vsel %vm1328_vm6, inf, %v1275_v18 }
0x1afc   : > { %v1326_v10 = vadd.s32 %v1325_v20, %v1323_v11  ;;  %v1338_v34 = vmin.f32 %v1331_v21, %v1332_v8 }
0x1afe   : > { %vm1329_vm7 = vcmp.eq.s32.totalorder %v1912_v40, %v1326_v10  ;;  %vm1330_vm8 = vcmp.eq.s32.totalorder %v1915_v41, %v1326_v10  ;;  %1339 = vmin.xlane.f32.xlu0 %v1338_v34 }
0x1aff   : > { %v1333_v27 = vsel %vm1329_vm7, inf, %v1276_v13  ;;  %v1334_v19 = vsel %vm1330_vm8, inf, %v1277_v24 }
0x1b00   : > { %v1341_v38 = vmin.f32 %v1333_v27, %v1334_v19 }
0x1b02   : > { %1342 = vmin.xlane.f32.xlu1 %v1341_v38 }
0x1b8b   : > { %v2157_v43 = vpop.xlane.xlu0 %1339 }
0x1b8c   : > { %vm1344_vm9 = vcmp.eq.f32.partialorder %v1331_v21, %v2157_v43  ;;  %vm1345_vm10 = vcmp.eq.f32.partialorder %v1332_v8, %v2157_v43 }
0x1b8d   : > { %v1348_v15 = vsel %vm1344_vm9, %v1912_v40, 256  ;;  %v1349_v18 = vsel %vm1345_vm10, %v1915_v41, 256 }
0x1b8e   : > { %vm1352_vm11 = vcmp.lt.s32.totalorder %v1348_v15, %v1349_v18 }
0x1b8f   : > { %v2163_v44 = vpop.xlane.xlu1 %1342  ;;  %v1353_v46 = vsel %vm1352_vm11, %v1348_v15, %v1349_v18 }
0x1b90   : > { %vm1346_vm12 = vcmp.eq.f32.partialorder %v1333_v27, %v2163_v44  ;;  %vm1347_vm13 = vcmp.eq.f32.partialorder %v1334_v19, %v2163_v44  ;;  %v1355_v13 = vshra.s32 %v1353_v46, 16  ;;  %v1354_v58 = vand.u32 65535, %v1353_v46 }
0x1b91   : > { %v1350_v24 = vsel %vm1346_vm12, %v1912_v40, 256  ;;  %v1351_v47 = vsel %vm1347_vm13, %v1915_v41, 256 }
0x1b92   : > { %v1357_v49 = vcvt.s32.f32 %v1355_v13  ;;  %vm1368_vm14 = vcmp.lt.s32.totalorder %v1350_v24, %v1351_v47  ;;  %v1356_v60 = vcvt.s32.f32 %v1354_v58 }
0x1b93   : > { %v1369_v51 = vsel %vm1368_vm14, %v1350_v24, %v1351_v47 }
0x1b94   : > { %1358 = vmin.xlane.f32.xlu0 %v1357_v49  ;;  %v1371_v55 = vshra.s32 %v1369_v51, 16  ;;  %v1370_v61 = vand.u32 65535, %v1369_v51 }
0x1b96   : > { %v1373_v56 = vcvt.s32.f32 %v1371_v55  ;;  %v1372_v2 = vcvt.s32.f32 %v1370_v61 }
0x1b98   : > { %1374 = vmin.xlane.f32.xlu1 %v1373_v56 }
0x1c21   : > { %v1359_v59 = vpop.xlane.xlu0 %1358 }
0x1c22   : > { %vm1360_vm15 = vcmp.eq.f32.partialorder %v1357_v49, %v1359_v59  ;;  %v1365_v4 = vcvt.f32.s32 %v1359_v59 }
0x1c23   : > { %v1361_v63 = vsel %vm1360_vm15, %v1356_v60, inf }
0x1c24   : > { %1362 = vmin.xlane.f32.xlu0 %v1361_v63  ;;  %v1366_v7 = vshll.u32 %v1365_v4, 16 }
0x1c25   : > { %v1375_v0 = vpop.xlane.xlu1 %1374 }
0x1c26   : > { %vm1376_vm0 = vcmp.eq.f32.partialorder %v1373_v56, %v1375_v0  ;;  %v1381_v20 = vcvt.f32.s32 %v1375_v0 }
0x1c27   : > { %v1377_v3 = vsel %vm1376_vm0, %v1372_v2, inf }
0x1c28   : > { %1378 = vmin.xlane.f32.xlu1 %v1377_v3  ;;  %v1382_v38 = vshll.u32 %v1381_v20, 16 }
0x1cb1   : > { %v1363_v5 = vpop.xlane.xlu0 %1362 }
0x1cb2   : > { %v1364_v11 = vcvt.f32.s32 %v1363_v5 }
0x1cb4   : > { %v1367_v10 = vadd.s32 %v1366_v7, %v1364_v11 }
0x1cb5   : > { %v1379_v34 = vpop.xlane.xlu1 %1378 }
0x1cb6   : > { %vm1384_vm1 = vcmp.eq.s32.totalorder %v1912_v40, %v1367_v10  ;;  %vm1385_vm2 = vcmp.eq.s32.totalorder %v1915_v41, %v1367_v10  ;;  %v1380_v15 = vcvt.f32.s32 %v1379_v34 }
0x1cb7   : > { %v1388_v18 = vsel %vm1384_vm1, inf, %v1331_v21  ;;  %v1389_v46 = vsel %vm1385_vm2, inf, %v1332_v8 }
0x1cb8   : > { %v1383_v13 = vadd.s32 %v1382_v38, %v1380_v15  ;;  %v1395_v24 = vmin.f32 %v1388_v18, %v1389_v46 }
0x1cba   : > { %vm1386_vm3 = vcmp.eq.s32.totalorder %v1912_v40, %v1383_v13  ;;  %vm1387_vm4 = vcmp.eq.s32.totalorder %v1915_v41, %v1383_v13  ;;  %1396 = vmin.xlane.f32.xlu0 %v1395_v24 }
0x1cbb   : > { %v1390_v47 = vsel %vm1386_vm3, inf, %v1333_v27  ;;  %v1391_v49 = vsel %vm1387_vm4, inf, %v1334_v19 }
0x1cbc   : > { %v1398_v51 = vmin.f32 %v1390_v47, %v1391_v49 }
0x1cbe   : > { %1399 = vmin.xlane.f32.xlu1 %v1398_v51 }
0x1d47   : > { %v2173_v55 = vpop.xlane.xlu0 %1396 }
0x1d48   : > { %vm1401_vm5 = vcmp.eq.f32.partialorder %v1388_v18, %v2173_v55  ;;  %vm1402_vm6 = vcmp.eq.f32.partialorder %v1389_v46, %v2173_v55 }
0x1d49   : > { %v1405_v21 = vsel %vm1401_vm5, %v1912_v40, 256  ;;  %v1406_v8 = vsel %vm1402_vm6, %v1915_v41, 256 }
0x1d4a   : > { %vm1409_vm7 = vcmp.lt.s32.totalorder %v1405_v21, %v1406_v8 }
0x1d4b   : > { %v2179_v56 = vpop.xlane.xlu1 %1399  ;;  %v1410_v58 = vsel %vm1409_vm7, %v1405_v21, %v1406_v8 }
0x1d4c   : > { %vm1403_vm8 = vcmp.eq.f32.partialorder %v1390_v47, %v2179_v56  ;;  %vm1404_vm9 = vcmp.eq.f32.partialorder %v1391_v49, %v2179_v56  ;;  %v1412_v27 = vshra.s32 %v1410_v58, 16  ;;  %v1411_v2 = vand.u32 65535, %v1410_v58 }
0x1d4d   : > { %v1407_v19 = vsel %vm1403_vm8, %v1912_v40, 256  ;;  %v1408_v59 = vsel %vm1404_vm9, %v1915_v41, 256 }
0x1d4e   : > { %vm1425_vm10 = vcmp.lt.s32.totalorder %v1407_v19, %v1408_v59  ;;  %v1414_v60 = vcvt.s32.f32 %v1412_v27  ;;  %v1413_v4 = vcvt.s32.f32 %v1411_v2 }
0x1d4f   : > { %v1426_v61 = vsel %vm1425_vm10, %v1407_v19, %v1408_v59 }
0x1d50   : > { %1415 = vmin.xlane.f32.xlu0 %v1414_v60  ;;  %v1428_v63 = vshra.s32 %v1426_v61, 16  ;;  %v1427_v5 = vand.u32 65535, %v1426_v61 }
0x1d52   : > { %v1430_v0 = vcvt.s32.f32 %v1428_v63  ;;  %v1429_v11 = vcvt.s32.f32 %v1427_v5 }
0x1d54   : > { %1431 = vmin.xlane.f32.xlu1 %v1430_v0 }
0x1ddd   : > { %v1416_v3 = vpop.xlane.xlu0 %1415 }
0x1dde   : > { %vm1417_vm11 = vcmp.eq.f32.partialorder %v1414_v60, %v1416_v3  ;;  %v1422_v34 = vcvt.f32.s32 %v1416_v3 }
0x1ddf   : > { %v1418_v7 = vsel %vm1417_vm11, %v1413_v4, inf }
0x1de0   : > { %1419 = vmin.xlane.f32.xlu0 %v1418_v7  ;;  %v1423_v15 = vshll.u32 %v1422_v34, 16 }
0x1de1   : > { %v1432_v20 = vpop.xlane.xlu1 %1431 }
0x1de2   : > { %vm1433_vm12 = vcmp.eq.f32.partialorder %v1430_v0, %v1432_v20  ;;  %v1438_v13 = vcvt.f32.s32 %v1432_v20 }
0x1de3   : > { %v1434_v10 = vsel %vm1433_vm12, %v1429_v11, inf }
0x1de4   : > { %1435 = vmin.xlane.f32.xlu1 %v1434_v10  ;;  %v1439_v8 = vshll.u32 %v1438_v13, 16 }
0x1e6d   : > { %v1420_v38 = vpop.xlane.xlu0 %1419 }
0x1e6e   : > { %v1421_v24 = vcvt.f32.s32 %v1420_v38 }
0x1e70   : > { %v1424_v51 = vadd.s32 %v1423_v15, %v1421_v24 }
0x1e71   : > { %v1436_v21 = vpop.xlane.xlu1 %1435 }
0x1e72   : > { %vm1441_vm13 = vcmp.eq.s32.totalorder %v1912_v40, %v1424_v51  ;;  %vm1442_vm14 = vcmp.eq.s32.totalorder %v1915_v41, %v1424_v51  ;;  %v1437_v58 = vcvt.f32.s32 %v1436_v21 }
0x1e73   : > { %v1445_v27 = vsel %vm1441_vm13, inf, %v1388_v18  ;;  %v1446_v19 = vsel %vm1442_vm14, inf, %v1389_v46 }
0x1e74   : > { %v1440_v59 = vadd.s32 %v1439_v8, %v1437_v58  ;;  %v1452_v60 = vmin.f32 %v1445_v27, %v1446_v19 }
0x1e76   : > { %vm1443_vm15 = vcmp.eq.s32.totalorder %v1912_v40, %v1440_v59  ;;  %vm1444_vm0 = vcmp.eq.s32.totalorder %v1915_v41, %v1440_v59  ;;  %1453 = vmin.xlane.f32.xlu0 %v1452_v60 }
0x1e77   : > { %v1447_v61 = vsel %vm1443_vm15, inf, %v1390_v47  ;;  %v1448_v63 = vsel %vm1444_vm0, inf, %v1391_v49 }
0x1e78   : > { %v1455_v0 = vmin.f32 %v1447_v61, %v1448_v63 }
0x1e7a   : > { %1456 = vmin.xlane.f32.xlu1 %v1455_v0 }
0x1f03   : > { %v2189_v2 = vpop.xlane.xlu0 %1453 }
0x1f04   : > { %vm1458_vm1 = vcmp.eq.f32.partialorder %v1445_v27, %v2189_v2  ;;  %vm1459_vm2 = vcmp.eq.f32.partialorder %v1446_v19, %v2189_v2 }
0x1f05   : > { %v1462_v18 = vsel %vm1458_vm1, %v1912_v40, 256  ;;  %v1463_v46 = vsel %vm1459_vm2, %v1915_v41, 256 }
0x1f06   : > { %vm1466_vm3 = vcmp.lt.s32.totalorder %v1462_v18, %v1463_v46 }
0x1f07   : > { %v2195_v3 = vpop.xlane.xlu1 %1456  ;;  %v1467_v4 = vsel %vm1466_vm3, %v1462_v18, %v1463_v46 }
0x1f08   : > { %vm1460_vm4 = vcmp.eq.f32.partialorder %v1447_v61, %v2195_v3  ;;  %vm1461_vm5 = vcmp.eq.f32.partialorder %v1448_v63, %v2195_v3  ;;  %v1469_v47 = vshra.s32 %v1467_v4, 16  ;;  %v1468_v34 = vand.u32 65535, %v1467_v4 }
0x1f09   : > { %v1464_v49 = vsel %vm1460_vm4, %v1912_v40, 256  ;;  %v1465_v5 = vsel %vm1461_vm5, %v1915_v41, 256 }
0x1f0a   : > { %vm1482_vm6 = vcmp.lt.s32.totalorder %v1464_v49, %v1465_v5  ;;  %v1471_v7 = vcvt.s32.f32 %v1469_v47  ;;  %v1470_v15 = vcvt.s32.f32 %v1468_v34 }
0x1f0b   : > { %v1483_v20 = vsel %vm1482_vm6, %v1464_v49, %v1465_v5 }
0x1f0c   : > { %1472 = vmin.xlane.f32.xlu0 %v1471_v7  ;;  %v1485_v11 = vshra.s32 %v1483_v20, 16  ;;  %v1484_v13 = vand.u32 65535, %v1483_v20 }
0x1f0e   : > { %v1487_v10 = vcvt.s32.f32 %v1485_v11  ;;  %v1486_v21 = vcvt.s32.f32 %v1484_v13 }
0x1f10   : > { %1488 = vmin.xlane.f32.xlu1 %v1487_v10 }
0x1f99   : > { %v1473_v38 = vpop.xlane.xlu0 %1472 }
0x1f9a   : > { %vm1474_vm7 = vcmp.eq.f32.partialorder %v1471_v7, %v1473_v38  ;;  %v1479_v58 = vcvt.f32.s32 %v1473_v38 }
0x1f9b   : > { %v1475_v24 = vsel %vm1474_vm7, %v1470_v15, inf }
0x1f9c   : > { %1476 = vmin.xlane.f32.xlu0 %v1475_v24  ;;  %v1480_v60 = vshll.u32 %v1479_v58, 16 }
0x1f9d   : > { %v1489_v51 = vpop.xlane.xlu1 %1488 }
0x1f9e   : > { %vm1490_vm8 = vcmp.eq.f32.partialorder %v1487_v10, %v1489_v51  ;;  %v1495_v0 = vcvt.f32.s32 %v1489_v51 }
0x1f9f   : > { %v1491_v8 = vsel %vm1490_vm8, %v1486_v21, inf }
0x1fa0   : > { %1492 = vmin.xlane.f32.xlu1 %v1491_v8  ;;  %v1496_v49 = vshll.u32 %v1495_v0, 16 }
0x2029   : > { %v1477_v59 = vpop.xlane.xlu0 %1476 }
0x202a   : > { %v1478_v18 = vcvt.f32.s32 %v1477_v59 }
0x202c   : > { %v1481_v46 = vadd.s32 %v1480_v60, %v1478_v18 }
0x202d   : > { %v1493_v47 = vpop.xlane.xlu1 %1492 }
0x202e   : > { %vm1498_vm9 = vcmp.eq.s32.totalorder %v1912_v40, %v1481_v46  ;;  %vm1499_vm10 = vcmp.eq.s32.totalorder %v1915_v41, %v1481_v46  ;;  %v1494_v4 = vcvt.f32.s32 %v1493_v47 }
0x202f   : > { %v1502_v5 = vsel %vm1498_vm9, inf, %v1445_v27  ;;  %v1503_v7 = vsel %vm1499_vm10, inf, %v1446_v19 }
0x2030   : > { %v1497_v20 = vadd.s32 %v1496_v49, %v1494_v4  ;;  %v1509_v11 = vmin.f32 %v1502_v5, %v1503_v7 }
0x2032   : > { %vm1500_vm11 = vcmp.eq.s32.totalorder %v1912_v40, %v1497_v20  ;;  %vm1501_vm12 = vcmp.eq.s32.totalorder %v1915_v41, %v1497_v20  ;;  %1510 = vmin.xlane.f32.xlu0 %v1509_v11 }
0x2033   : > { %v1504_v10 = vsel %vm1500_vm11, inf, %v1447_v61  ;;  %v1505_v34 = vsel %vm1501_vm12, inf, %v1448_v63 }
0x2034   : > { %v1512_v38 = vmin.f32 %v1504_v10, %v1505_v34 }
0x2036   : > { %1513 = vmin.xlane.f32.xlu1 %v1512_v38 }
0x20bf   : > { %v2205_v15 = vpop.xlane.xlu0 %1510 }
0x20c0   : > { %vm1515_vm13 = vcmp.eq.f32.partialorder %v1502_v5, %v2205_v15  ;;  %vm1516_vm14 = vcmp.eq.f32.partialorder %v1503_v7, %v2205_v15 }
0x20c1   : > { %v1519_v27 = vsel %vm1515_vm13, %v1912_v40, 256  ;;  %v1520_v19 = vsel %vm1516_vm14, %v1915_v41, 256 }
0x20c2   : > { %vm1523_vm15 = vcmp.lt.s32.totalorder %v1519_v27, %v1520_v19 }
0x20c3   : > { %v2211_v13 = vpop.xlane.xlu1 %1513  ;;  %v1524_v24 = vsel %vm1523_vm15, %v1519_v27, %v1520_v19 }
0x20c4   : > { %2388 = vst [vmem:[#allocation4_spill] sm:$0xff] %v2211_v13  ;;  %vm1517_vm0 = vcmp.eq.f32.partialorder %v1504_v10, %v2211_v13  ;;  %vm1518_vm1 = vcmp.eq.f32.partialorder %v1505_v34, %v2211_v13  ;;  %v1526_v61 = vshra.s32 %v1524_v24, 16  ;;  %v1525_v60 = vand.u32 65535, %v1524_v24 }
0x20c5   : > { %v1521_v63 = vsel %vm1517_vm0, %v1912_v40, 256  ;;  %v1522_v51 = vsel %vm1518_vm1, %v1915_v41, 256 }
0x20c6   : > { %vm1539_vm2 = vcmp.lt.s32.totalorder %v1521_v63, %v1522_v51  ;;  %v1528_v21 = vcvt.s32.f32 %v1526_v61  ;;  %v1527_v18 = vcvt.s32.f32 %v1525_v60 }
0x20c7   : > { %v1540_v8 = vsel %vm1539_vm2, %v1521_v63, %v1522_v51 }
0x20c8   : > { %1529 = vmin.xlane.f32.xlu0 %v1528_v21  ;;  %v1542_v58 = vshra.s32 %v1540_v8, 16  ;;  %v1541_v46 = vand.u32 65535, %v1540_v8 }
0x20ca   : > { %v1544_v59 = vcvt.s32.f32 %v1542_v58  ;;  %v1543_v4 = vcvt.s32.f32 %v1541_v46 }
0x20cc   : > { %1545 = vmin.xlane.f32.xlu1 %v1544_v59 }
0x2155   : > { %v1530_v0 = vpop.xlane.xlu0 %1529 }
0x2156   : > { %vm1531_vm3 = vcmp.eq.f32.partialorder %v1528_v21, %v1530_v0  ;;  %v1536_v11 = vcvt.f32.s32 %v1530_v0 }
0x2157   : > { %v1532_v47 = vsel %vm1531_vm3, %v1527_v18, inf }
0x2158   : > { %1533 = vmin.xlane.f32.xlu0 %v1532_v47  ;;  %v1537_v27 = vshll.u32 %v1536_v11, 16 }
0x2159   : > { %v1546_v49 = vpop.xlane.xlu1 %1545 }
0x215a   : > { %vm1547_vm4 = vcmp.eq.f32.partialorder %v1544_v59, %v1546_v49  ;;  %v1552_v19 = vcvt.f32.s32 %v1546_v49 }
0x215b   : > { %v1548_v20 = vsel %vm1547_vm4, %v1543_v4, inf }
0x215c   : > { %1549 = vmin.xlane.f32.xlu1 %v1548_v20  ;;  %v1553_v58 = vshll.u32 %v1552_v19, 16 }
0x21e5   : > { %v1534_v38 = vpop.xlane.xlu0 %1533 }
0x21e6   : > { %v1535_v61 = vcvt.f32.s32 %v1534_v38 }
0x21e8   : > { %v1538_v63 = vadd.s32 %v1537_v27, %v1535_v61 }
0x21e9   : > { %v1550_v51 = vpop.xlane.xlu1 %1549 }
0x21ea   : > { %vm1555_vm5 = vcmp.eq.s32.totalorder %v1912_v40, %v1538_v63  ;;  %vm1556_vm6 = vcmp.eq.s32.totalorder %v1915_v41, %v1538_v63  ;;  %v1551_v24 = vcvt.f32.s32 %v1550_v51 }
0x21eb   : > { %v1559_v21 = vsel %vm1555_vm5, inf, %v1502_v5  ;;  %v1560_v8 = vsel %vm1556_vm6, inf, %v1503_v7  ;;  %vm537_vm5 = vcmp.eq.s32.totalorder %v1912_v40, 0  ;;  %vm594_vm6 = vcmp.eq.s32.totalorder %v1912_v40, 1 }
0x21ec   : > { %v1554_v60 = vadd.s32 %v1553_v58, %v1551_v24  ;;  %v1566_v18 = vmin.f32 %v1559_v21, %v1560_v8 }
0x21ee   : > { %vm1557_vm7 = vcmp.eq.s32.totalorder %v1912_v40, %v1554_v60  ;;  %vm1558_vm8 = vcmp.eq.s32.totalorder %v1915_v41, %v1554_v60  ;;  %1567 = vmin.xlane.f32.xlu0 %v1566_v18 }
0x21ef   : > { %v1561_v59 = vsel %vm1557_vm7, inf, %v1504_v10  ;;  %v1562_v0 = vsel %vm1558_vm8, inf, %v1505_v34  ;;  %vm651_vm7 = vcmp.eq.s32.totalorder %v1912_v40, 2  ;;  %vm708_vm8 = vcmp.eq.s32.totalorder %v1912_v40, 3 }
0x21f0   : > { %v1569_v46 = vmin.f32 %v1561_v59, %v1562_v0 }
0x21f2   : > { %1570 = vmin.xlane.f32.xlu1 %v1569_v46 }
0x227b   : > { %v2221_v47 = vpop.xlane.xlu0 %1567 }
0x227c   : > { %vm1572_vm9 = vcmp.eq.f32.partialorder %v1559_v21, %v2221_v47  ;;  %vm1573_vm10 = vcmp.eq.f32.partialorder %v1560_v8, %v2221_v47 }
0x227d   : > { %v1576_v5 = vsel %vm1572_vm9, %v1912_v40, 256  ;;  %v1577_v7 = vsel %vm1573_vm10, %v1915_v41, 256  ;;  %vm765_vm9 = vcmp.eq.s32.totalorder %v1912_v40, 4  ;;  %vm822_vm10 = vcmp.eq.s32.totalorder %v1912_v40, 5 }
0x227e   : > { %vm1580_vm11 = vcmp.lt.s32.totalorder %v1576_v5, %v1577_v7 }
0x227f   : > { %v2227_v49 = vpop.xlane.xlu1 %1570  ;;  %v1581_v4 = vsel %vm1580_vm11, %v1576_v5, %v1577_v7  ;;  %vm879_vm11 = vcmp.eq.s32.totalorder %v1912_v40, 6 }
0x2280   : > { %2389 = vst [vmem:[#allocation5_spill] sm:$0xff] %v2227_v49  ;;  %vm1574_vm12 = vcmp.eq.f32.partialorder %v1561_v59, %v2227_v49  ;;  %vm1575_vm13 = vcmp.eq.f32.partialorder %v1562_v0, %v2227_v49  ;;  %v1583_v10 = vshra.s32 %v1581_v4, 16  ;;  %v1582_v61 = vand.u32 65535, %v1581_v4 }
0x2281   : > { %v1578_v34 = vsel %vm1574_vm12, %v1912_v40, 256  ;;  %v1579_v20 = vsel %vm1575_vm13, %v1915_v41, 256  ;;  %vm936_vm12 = vcmp.eq.s32.totalorder %v1912_v40, 7  ;;  %vm993_vm13 = vcmp.eq.s32.totalorder %v1912_v40, 8 }
0x2282   : > { %vm1596_vm14 = vcmp.lt.s32.totalorder %v1578_v34, %v1579_v20  ;;  %v1585_v11 = vcvt.s32.f32 %v1583_v10  ;;  %v1584_v51 = vcvt.s32.f32 %v1582_v61 }
0x2283   : > { %v1597_v38 = vsel %vm1596_vm14, %v1578_v34, %v1579_v20  ;;  %vm1050_vm14 = vcmp.eq.s32.totalorder %v1912_v40, 9 }
0x2284   : > { %1586 = vmin.xlane.f32.xlu0 %v1585_v11  ;;  %v1599_v27 = vshra.s32 %v1597_v38, 16  ;;  %v1598_v58 = vand.u32 65535, %v1597_v38 }
0x2286   : > { %v1601_v19 = vcvt.s32.f32 %v1599_v27  ;;  %v1600_v18 = vcvt.s32.f32 %v1598_v58 }
0x2288   : > { %1602 = vmin.xlane.f32.xlu1 %v1601_v19 }
0x2311   : > { %v1587_v63 = vpop.xlane.xlu0 %1586 }
0x2312   : > { %vm1588_vm15 = vcmp.eq.f32.partialorder %v1585_v11, %v1587_v63  ;;  %v1593_v5 = vcvt.f32.s32 %v1587_v63 }
0x2313   : > { %v1589_v24 = vsel %vm1588_vm15, %v1584_v51, inf  ;;  %vm1107_vm15 = vcmp.eq.s32.totalorder %v1912_v40, 10 }
0x2314   : > { %1590 = vmin.xlane.f32.xlu0 %v1589_v24  ;;  %v1594_v10 = vshll.u32 %v1593_v5, 16  ;;  %v2390_v24 = vld [vmem:[#allocation4_spill] sm:$0xff] }
0x2315   : > { %v1603_v60 = vpop.xlane.xlu1 %1602 }
0x2316   : > { %vm1604_vm0 = vcmp.eq.f32.partialorder %v1601_v19, %v1603_v60  ;;  %v1609_v34 = vcvt.f32.s32 %v1603_v60  ;;  %v2391_v60 = vld [vmem:[#allocation5_spill] sm:$0xff] }
0x2317   : > { %v1605_v46 = vsel %vm1604_vm0, %v1600_v18, inf  ;;  %vm1164_vm0 = vcmp.eq.s32.totalorder %v1912_v40, 11 }
0x2318   : > { %1606 = vmin.xlane.f32.xlu1 %v1605_v46  ;;  %v1610_v13 = vshll.u32 %v1609_v34, 16 }
0x23a1   : > { %v1591_v7 = vpop.xlane.xlu0 %1590 }
0x23a2   : > { %v1592_v20 = vcvt.f32.s32 %v1591_v7 }
0x23a4   : > { %v1595_v49 = vadd.s32 %v1594_v10, %v1592_v20 }
0x23a5   : > { %v1607_v27 = vpop.xlane.xlu1 %1606 }
0x23a6   : > { %vm1612_vm1 = vcmp.eq.s32.totalorder %v1912_v40, %v1595_v49  ;;  %vm1613_vm2 = vcmp.eq.s32.totalorder %v1915_v41, %v1595_v49  ;;  %v1608_v4 = vcvt.f32.s32 %v1607_v27 }
0x23a7   : > { %v1616_v11 = vsel %vm1612_vm1, inf, %v1559_v21  ;;  %v1617_v38 = vsel %vm1613_vm2, inf, %v1560_v8  ;;  %v538_v21 = vsel %vm537_vm5, %v1917_v42, inf  ;;  %vm1221_vm1 = vcmp.eq.s32.totalorder %v1912_v40, 12 }
0x23a8   : > { %v1611_v61 = vadd.s32 %v1610_v13, %v1608_v4  ;;  %v1623_v51 = vmin.f32 %v1616_v11, %v1617_v38  ;;  %v595_v13 = vsel %vm594_vm6, %v1933_v14, %v538_v21  ;;  %vm1278_vm2 = vcmp.eq.s32.totalorder %v1912_v40, 13 }
0x23aa   : > { %vm1614_vm3 = vcmp.eq.s32.totalorder %v1912_v40, %v1611_v61  ;;  %vm1615_vm4 = vcmp.eq.s32.totalorder %v1915_v41, %v1611_v61  ;;  %1624 = vmin.xlane.f32.xlu0 %v1623_v51  ;;  %v652_v41 = vsel %vm651_vm7, %v1949_v54, %v595_v13  ;;  %v1665_v13 = vld [vmem:[%s2383_s6] sm:$0xff] (!%p1759_p5) }
0x23ab   : > { %v1618_v19 = vsel %vm1614_vm3, inf, %v1561_v59  ;;  %v1619_v63 = vsel %vm1615_vm4, inf, %v1562_v0  ;;  %v709_v8 = vsel %vm708_vm8, %v1965_v28, %v652_v41  ;;  %v539_v59 = vsel %vm537_vm5, %v1923_v45, inf }
0x23ac   : > { %v1626_v58 = vmin.f32 %v1618_v19, %v1619_v63  ;;  %v766_v42 = vsel %vm765_vm9, %v1981_v6, %v709_v8  ;;  %v596_v14 = vsel %vm594_vm6, %v1939_v17, %v539_v59  ;;  %vm1335_vm3 = vcmp.eq.s32.totalorder %v1912_v40, 14 }
0x23ad   : > { %v823_v54 = vsel %vm822_vm10, %v1997_v50, %v766_v42  ;;  %v653_v28 = vsel %vm651_vm7, %v1955_v57, %v596_v14  ;;  %vm1392_vm4 = vcmp.eq.s32.totalorder %v1912_v40, 15  ;;  %vm1449_vm5 = vcmp.eq.s32.totalorder %v1912_v40, 16  ;;  %v1760_v42 = vld [vmem:[#allocation3] ss:$0 sm:$0xff] (!%p1759_p5)  ;;  %v1666_v14 = vld [vmem:[%s2383_s6 + $0x8] sm:$0xff] (!%p1759_p5) }
0x23ae   : > { %1627 = vmin.xlane.f32.xlu1 %v1626_v58  ;;  %v880_v45 = vsel %vm879_vm11, %v2013_v29, %v823_v54  ;;  %v710_v6 = vsel %vm708_vm8, %v1971_v31, %v653_v28  ;;  %vm1506_vm6 = vcmp.eq.s32.totalorder %v1912_v40, 17  ;;  %vm1563_vm7 = vcmp.eq.s32.totalorder %v1912_v40, 18 }
0x23af   : > { %v937_v17 = vsel %vm936_vm12, %v2029_v12, %v880_v45  ;;  %v767_v57 = vsel %vm765_vm9, %v1987_v9, %v710_v6  ;;  %vm1620_vm8 = vcmp.eq.s32.totalorder %v1912_v40, 19  ;;  %vm1629_vm9 = vcmp.eq.s32.totalorder %v1912_v40, 20 }
0x23b0   : > { %v994_v50 = vsel %vm993_vm13, %v2045_v62, %v937_v17  ;;  %v824_v31 = vsel %vm822_vm10, %v2003_v53, %v767_v57  ;;  %vm1642_vm10 = vcmp.ge.s32.totalorder (!%p1759_p5), %v1912_v40, 1 }
0x23b1   : > { %v1051_v29 = vsel %vm1050_vm14, %v2061_v48, %v994_v50  ;;  %v881_v9 = vsel %vm879_vm11, %v2019_v33, %v824_v31  ;;  %vm1643_vm11 = vcmp.le.s32.totalorder (!%p1759_p5), %v1912_v40, 20 }
0x23b2   : > { %v1108_v12 = vsel %vm1107_vm15, %v2077_v36, %v1051_v29  ;;  %v938_v53 = vsel %vm936_vm12, %v2035_v16, %v881_v9  ;;  %vm1644_vm12 = vmand (!%p1759_p5), %vm1642_vm10, %vm1643_vm11 }
0x23b3   : > { %v1165_v62 = vsel %vm1164_vm0, %v2093_v30, %v1108_v12  ;;  %v995_v33 = vsel %vm993_vm13, %v2051_v1, %v938_v53 }
0x23b4   : > { %v1222_v48 = vsel %vm1221_vm1, %v2109_v25, %v1165_v62  ;;  %v1052_v16 = vsel %vm1050_vm14, %v2067_v52, %v995_v33  ;;  %vm1688_vm14 = vcmask (!%p1759_p5), 7168  }
0x23b5   : > { %v1279_v36 = vsel %vm1278_vm2, %v2125_v37, %v1222_v48  ;;  %v1109_v1 = vsel %vm1107_vm15, %v2083_v39, %v1052_v16 }
0x23b6   : > { %v1336_v30 = vsel %vm1335_vm3, %v2141_v22, %v1279_v36  ;;  %v1166_v52 = vsel %vm1164_vm0, %v2099_v35, %v1109_v1 }
0x23b7   : > { %v1393_v25 = vsel %vm1392_vm4, %v2157_v43, %v1336_v30  ;;  %v1223_v39 = vsel %vm1221_vm1, %v2115_v26, %v1166_v52 }
0x23b8   : > { %v1450_v37 = vsel %vm1449_vm5, %v2173_v55, %v1393_v25  ;;  %v1280_v35 = vsel %vm1278_vm2, %v2131_v23, %v1223_v39 }
0x23b9   : > { %v1507_v22 = vsel %vm1506_vm6, %v2189_v2, %v1450_v37  ;;  %v1337_v26 = vsel %vm1335_vm3, %v2147_v32, %v1280_v35 }
0x23ba   : > { %v1564_v43 = vsel %vm1563_vm7, %v2205_v15, %v1507_v22  ;;  %v1394_v55 = vsel %vm1392_vm4, %v2163_v44, %v1337_v26 }
0x23bb   : > { %v1621_v23 = vsel %vm1620_vm8, %v2221_v47, %v1564_v43  ;;  %v1451_v2 = vsel %vm1449_vm5, %v2179_v56, %v1394_v55 }
0x23bc   : > { %v1508_v32 = vsel %vm1506_vm6, %v2195_v3, %v1451_v2 }
0x23bd   : > { %v1565_v15 = vsel %vm1563_vm7, %v2390_v24, %v1508_v32 }
0x23be   : > { %v1622_v18 = vsel %vm1620_vm8, %v2391_v60, %v1565_v15 }
0x2437   : > { %v1625_v0 = vpop.xlane.xlu0 %1624  ;;  %1637 = sbr.rel (%p1759_p5) target bundleno = 9487 (0x250f), region = 60 }
0x2438   : > { %v1630_v49 = vsel %vm1629_vm9, %v1625_v0, %v1621_v23 }
0x2439   : > { %1632 = vst [vmem:[#allocation2] sm:$0xff] %v1630_v49  ;;  %1790 = vlog2.f32 (!%p1759_p5), %v1630_v49 }
0x243b   : > { %v1628_v44 = vpop.xlane.xlu1 %1627 }
0x243c   : > { %v1631_v46 = vsel %vm1629_vm9, %v1628_v44, %v1622_v18 }
0x243d   : > { %1633 = vst [vmem:[#allocation2 + $0x10] sm:$0xff] %v1631_v46  ;;  %1792 = vlog2.f32 (!%p1759_p5), %v1631_v46 }
0x243e   : > { %1794 = vlog2.f32 %v1625_v0 }
0x243f   : > { %1796 = vlog2.f32 %v1628_v44 }
0x2443   : > { %v1791_v56 = vpop.eup %1790 }
0x2444   : > { %v1639_v47 = vmul.f32 0.6931472, %v1791_v56 }
0x2446   : > { %v1645_v7 = vsel %vm1644_vm12, %v1639_v47, 0.0 }
0x2447   : > { %v1793_v3 = vpop.eup %1792  ;;  %1647 = vadd.xlane.f32.xlu0 %v1645_v7 }
0x2448   : > { %v1641_v5 = vmul.f32 0.6931472, %v1793_v3  ;;  %v1795_v34 = vpop.eup %1794 }
0x2449   : > { %v1652_v20 = vmul.f32 0.6931472, %v1795_v34  ;;  %v1797_v27 = vpop.eup %1796 }
0x244a   : > { %v1646_v10 = vsel %vm1644_vm12, %v1641_v5, 0.0  ;;  %v1654_v11 = vmul.f32 0.6931472, %v1797_v27 }
0x244b   : > { %1649 = vadd.xlane.f32.xlu0 %v1646_v10  ;;  %v1655_v4 = vmul.f32 20.0, %v1652_v20 }
0x244c   : > { %v1656_v51 = vmul.f32 20.0, %v1654_v11 }
0x24d4   : > { %v1648_v38 = vpop.xlane.xlu0 %1647 }
0x24d5   : > { %v1657_v61 = vsub.f32 %v1648_v38, %v1655_v4 }
0x24d7   : > { %v1659_v40 = vmin.f32 %v1657_v61, -1e-12 }
0x24d8   : > { %v1650_v19 = vpop.xlane.xlu0 %1649 }
0x24d9   : > { %1798 = vrcp.f32 %v1659_v40  ;;  %v1658_v63 = vsub.f32 %v1650_v19, %v1656_v51 }
0x24db   : > { %v1660_v58 = vmin.f32 %v1658_v63, -1e-12 }
0x24dd   : > { %1800 = vrcp.f32 %v1660_v58 }
0x24e3   : > { %v1799_v21 = vpop.eup %1798 }
0x24e4   : > { %v1662_v41 = vmul.f32 -40.0, %v1799_v21 }
0x24e6   : > { %v1667_v8 = vmul.f32 %v1665_v13, %v1662_v41 }
0x24e7   : > { %v1801_v59 = vpop.eup %1800 }
0x24e8   : > { %v1664_v54 = vmul.f32 -40.0, %v1801_v59  ;;  %v1676_v28 = vadd.f32 %v1760_v42, %v1667_v8 }
0x24ea   : > { %v1668_v45 = vmul.f32 %v1666_v14, %v1664_v54 }
0x24ec   : > { %v1677_v6 = vadd.f32 %v1676_v28, %v1668_v45 }
0x24ee   : > { %vm1678_vm13 = vcmp.ge.f32.partialorder %v1677_v6, 0.0  ;;  %v1679_v17 = vsub.f32 0.0, %v1677_v6 }
0x24f0   : > { %v1680_v57 = vsel %vm1678_vm13, %v1679_v17, %v1677_v6 }
0x24f1   : > { %v1681_v50 = vmul.f32 1.442695, %v1680_v57 }
0x24f3   : > { %1802 = vpow2.f32 %v1681_v50 }
0x24fd   : > { %v1803_v31 = vpop.eup %1802 }
0x24fe   : > { %v1683_v29 = vadd.f32 1.0, %v1803_v31 }
0x2500   : > { %1804 = vrcp.f32 %v1683_v29 }
0x250a   : > { %v1805_v9 = vpop.eup %1804 }
0x250b   : > { %v1686_v12 = vmul.f32 %v1805_v9, %v1803_v31 }
0x250d   : > { %v1687_v53 = vsel %vm1678_vm13, %v1805_v9, %v1686_v12 }
0x250e   : > { %1689 = vst.msk [vmem:[%s2385_s8] sm:$0xff] %vm1688_vm14, %v1687_v53 }
0x250f PF: > { %s20_s29 = sadd.s32 1, %s1812_s29  }
0x2510   : > { %p17_p6 = scmp.ge.s32.totalorder %s20_s29, 4  }
0x2512   :  { %19 = sbr.rel (!%p17_p6) target bundleno = 3 (0x3), region = 95 }

</bundles_post_ra>
